<compile_context>
chip_gen: v6e
topology: v6e:2x2x1
jax: 0.10.0
libtpu: 0.0.40
codegen_flags: <defaults>
</compile_context>

<pallas_src>
import functools

import jax
import jax.numpy as jnp
from jax.experimental import pallas as pl
from jax.experimental.pallas import tpu as pltpu

# ---------------- configuration (fixed by the module) ------------------------
DIM = 4                          # state dimension
HIDDEN_DIMS = (32, 32)           # hidden_dims argument for `net`
NET2_HIDDEN = (32, 32, 64, 32)   # hard-coded in the module for `net2`
N_POWER_ITER = 5                 # n_power_iterations
BATCH = 256                      # flattened batch*seq rows for the demo

# Column layout of the fused activation stacks (built by pack_params):
#   z0/z1 (width _C0): [ net hidden (0:32) | net2 hidden (32:64) | ones (64) | pad ]
#   z2    (width _C2): [ net2 h3 (0:64) | ones (64) | pad | y1 pre-tanh (72:76) | pad ]
#   z3    (width _C3): [ net2 h4 (0:32) | ones (32) | pad ]
_H = 32
_ONES0 = 2 * _H       # 64
_C0 = 72
_Y1 = 72
_C2 = 80
_ONES3 = 32
_C3 = 40
_C4 = 8


# ---------------- Pallas kernel ----------------------------------------------
def resnet_flow_kernel(x_ref, h_ref, t_ref, slab_ref, out_ref, *, layout):
    """x:(B,4) h:(B,4) t:(B,1) slab:(R,128) packed weights; out:(B,4).

    Batch sits on sublanes, features on lanes.  Every bias (and the carried
    ones column that supplies later biases) is folded into the packed weight
    blocks, so the whole forward is 6 MXU matmuls + elementwise tails.
    """
    f32 = jnp.float32

    def wload(name):
        off, r, c = layout[name]            # static Python ints -> cheap slices
        return slab_ref[off:off + r, 0:c]

    # ---- fused first layers of net ([x|h|t]) and net2 ([x|t]).
    # NOTE: h is routed through an explicit zero block for the net2 columns,
    # so finite h never contributes there (Inf/NaN h would leak 0*Inf = NaN).
    # b0's 1.0 at column _ONES0 starts the carried ones lane.
    pre0 = (jnp.dot(x_ref[...], wload("w0x"), preferred_element_type=f32)
            + jnp.dot(h_ref[...], wload("w0h"), preferred_element_type=f32)
            + t_ref[...] * wload("w0t")
            + wload("b0"))
    z0 = jnp.maximum(pre0, 0.0)                                   # (B, 72)

    # ---- block-diagonal fused second layers (net 32->32, net2 32->32), ReLU.
    z1 = jnp.maximum(
        jnp.dot(z0, wload("w1"), preferred_element_type=f32), 0.0)  # (B, 72)

    # ---- fused third matmul: net2 32->64 (ReLU) and net final 32->4 (Tanh)
    #      share the same input stack z1.
    z2 = jnp.dot(z1, wload("w2"), preferred_element_type=f32)       # (B, 80)
    y1 = jnp.tanh(z2[:, _Y1:_Y1 + DIM])                             # net output
    h3 = jnp.maximum(z2, 0.0)          # net2 h3 (+ carried ones; extra cols hit
                                       # zero weight rows of w3, so harmless)

    # ---- net2 tail: 64 -> 32 (ReLU) -> 4 (Tanh)
    z3 = jnp.maximum(
        jnp.dot(h3, wload("w3"), preferred_element_type=f32), 0.0)  # (B, 40)
    y2 = jnp.tanh(
        jnp.dot(z3, wload("w4"), preferred_element_type=f32)[:, 0:DIM])

    # ---- TimeTanh(t) and residual update, stored directly as (B, dim).
    t_out = jnp.tanh(t_ref[...] * wload("tscale"))                  # (B, 4)
    out_ref[...] = (x_ref[...] + t_out * (y1 * y2)).astype(out_ref.dtype)


# ---------------- wrapper -----------------------------------------------------
def resnet_flow_block(x, h, t, slab, layout):
    n_rows, dim = x.shape
    assert dim == DIM and h.shape == (n_rows, DIM) and t.shape == (n_rows, 1)

    kernel = functools.partial(resnet_flow_kernel, layout=layout)
    # Single invocation (no grid): whole arrays live in VMEM, one DMA each,
    # no per-step overhead, no double-buffering of the constant weight slab.
    return pl.pallas_call(
        kernel,
        out_shape=jax.ShapeDtypeStruct((n_rows, DIM), jnp.float32),
        in_specs=[pl.BlockSpec(memory_space=pltpu.MemorySpace.VMEM)] * 4,
        out_specs=pl.BlockSpec(memory_space=pltpu.MemorySpace.VMEM),
    )(x, h, t, slab)


# ---------------- deterministic parameter construction ------------------------
def _torch_linear_init(key, fan_in, fan_out):
    bound = 1.0 / jnp.sqrt(jnp.float32(fan_in))
    kw, kb = jax.random.split(key)
    w = jax.random.uniform(kw, (fan_out, fan_in), jnp.float32, -bound, bound)
    b = jax.random.uniform(kb, (fan_out,), jnp.float32, -bound, bound)
    return w, b


def _spectral_norm(w, key, n_iter):
    # torch.nn.utils.spectral_norm: W_eff = W / sigma_max(W) (power iteration).
    u = jax.random.normal(key, (w.shape[0],), jnp.float32)
    u = u / (jnp.linalg.norm(u) + 1e-12)
    v = jnp.zeros((w.shape[1],), jnp.float32)
    for _ in range(n_iter):
        v = w.T @ u
        v = v / (jnp.linalg.norm(v) + 1e-12)
        u = w @ v
        u = u / (jnp.linalg.norm(u) + 1e-12)
    sigma = u @ (w @ v)
    return w / sigma


def _make_mlp(key, in_dim, hidden, out_dim):
    dims = [in_dim] + list(hidden) + [out_dim]
    layers = []
    for i in range(len(dims) - 1):
        key, k1, k2 = jax.random.split(key, 3)
        w, b = _torch_linear_init(k1, dims[i], dims[i + 1])   # torch (out, in)
        w = _spectral_norm(w, k2, N_POWER_ITER)
        layers.append((w, b))
    return layers


def build_raw_params(key):
    k_t, k_net, k_net2 = jax.random.split(key, 3)
    tscale = 0.5 * jax.random.normal(k_t, (DIM,), jnp.float32)    # TimeTanh w
    net = _make_mlp(k_net, 2 * DIM + 1, HIDDEN_DIMS, DIM)
    net2 = _make_mlp(k_net2, DIM + 1, NET2_HIDDEN, DIM)
    return {"tscale": tscale, "net": net, "net2": net2}


def pack_params(raw):
    """Pack all weights (transposed, fused, biases folded into an extra row
    driven by a carried ones column) into one 128-lane f32 slab."""
    assert DIM == 4 and HIDDEN_DIMS == (32, 32) and NET2_HIDDEN == (32, 32, 64, 32)
    f32 = jnp.float32
    D = DIM

    tscale = raw["tscale"]
    (nW0, nb0), (nW1, nb1), (nW2, nb2) = raw["net"]
    (mW0, mb0), (mW1, mb1), (mW2, mb2), (mW3, mb3), (mW4, mb4) = raw["net2"]

    def zeros(r, c):
        return jnp.zeros((r, c), f32)

    # Layer 1 split by operand; both nets' first layers share each matmul.
    w0x = zeros(D, _C0).at[:, 0:_H].set(nW0[:, 0:D].T).at[:, _H:2 * _H].set(mW0[:, 0:D].T)
    w0h = zeros(D, _C0).at[:, 0:_H].set(nW0[:, D:2 * D].T)
    w0t = zeros(1, _C0).at[0, 0:_H].set(nW0[:, 2 * D]).at[0, _H:2 * _H].set(mW0[:, D])
    b0 = zeros(1, _C0).at[0, 0:_H].set(nb0).at[0, _H:2 * _H].set(mb0).at[0, _ONES0].set(1.0)

    # Block-diagonal fused second layers; biases in the ones row; ones carried.
    w1 = zeros(_C0, _C0)
    w1 = w1.at[0:_H, 0:_H].set(nW1.T).at[_H:2 * _H, _H:2 * _H].set(mW1.T)
    w1 = w1.at[_ONES0, 0:_H].set(nb1).at[_ONES0, _H:2 * _H].set(mb1).at[_ONES0, _ONES0].set(1.0)

    # Third matmul: net2 32->64 at cols 0:64, net final 32->4 at cols _Y1:_Y1+4.
    w2 = zeros(_C0, _C2)
    w2 = w2.at[_H:2 * _H, 0:64].set(mW2.T).at[_ONES0, 0:64].set(mb2)
    w2 = w2.at[0:_H, _Y1:_Y1 + D].set(nW2.T).at[_ONES0, _Y1:_Y1 + D].set(nb2)
    w2 = w2.at[_ONES0, _ONES0].set(1.0)

    w3 = zeros(_C2, _C3)
    w3 = w3.at[0:64, 0:_H].set(mW3.T).at[_ONES0, 0:_H].set(mb3).at[_ONES0, _ONES3].set(1.0)

    w4 = zeros(_C3, _C4)
    w4 = w4.at[0:_H, 0:D].set(mW4.T).at[_ONES3, 0:D].set(mb4)

    entries = [
        ("tscale", tscale[None, :]),
        ("w0x", w0x), ("w0h", w0h), ("w0t", w0t), ("b0", b0),
        ("w1", w1), ("w2", w2), ("w3", w3), ("w4", w4),
    ]

    layout = {}
    off = 0
    for name, arr in entries:
        r, c = int(arr.shape[0]), int(arr.shape[1])
        assert c <= 128
        layout[name] = (off, r, c)
        off += -(-r // 8) * 8                     # 8-row (sublane) alignment

    slab = jnp.zeros((off, 128), jnp.float32)
    for name, arr in entries:
        r0, r, c = layout[name]
        slab = slab.at[r0:r0 + r, 0:c].set(arr.astype(jnp.float32))
    return slab, layout


# ---------------- pure-JAX reference (mirrors the PyTorch forward) -------------
def reference_forward(x, h, t, raw):
    t_out = jnp.tanh(t * raw["tscale"][None, :])

    z = jnp.concatenate([x, h, t], axis=-1)
    for i, (w, b) in enumerate(raw["net"]):
        z = z @ w.T + b
        z = jnp.tanh(z) if i == len(raw["net"]) - 1 else jax.nn.relu(z)
    y1 = z

    z = jnp.concatenate([x, t], axis=-1)
    for i, (w, b) in enumerate(raw["net2"]):
        z = z @ w.T + b
        z = jnp.tanh(z) if i == len(raw["net2"]) - 1 else jax.nn.relu(z)
    y2 = z

    return x + t_out * (y1 * y2)


# ---------------- main ---------------------------------------------------------
if __name__ == "__main__":
    key = jax.random.PRNGKey(0)
    k_x, k_h, k_t, k_p = jax.random.split(key, 4)

    x = jax.random.normal(k_x, (BATCH, DIM), jnp.float32)
    h = jax.random.normal(k_h, (BATCH, DIM), jnp.float32)
    t = jax.random.uniform(k_t, (BATCH, 1), jnp.float32)

    raw = build_raw_params(k_p)
    slab, layout = pack_params(raw)

    out = jax.block_until_ready(resnet_flow_block(x, h, t, slab, layout))

    ref = reference_forward(x, h, t, raw)
    assert out.shape == (BATCH, DIM)
    err = float(jnp.max(jnp.abs(out - ref)))
    assert err < 1e-4, f"mismatch vs JAX reference, max abs err = {err}"

    # TODO(synk): torch spectral_norm re-runs power iteration on every
    # training-mode forward; sigma is frozen at setup here (inference
    # semantics).  The h=None branch and inverse() are not implemented.
    print("KERNEL_OK")
</pallas_src>

<mosaic_0001>
module attributes {stable_mosaic.version = 11 : i64} {
  func.func @resnet_flow_kernel(%arg0: memref<256x4xf32, #tpu.memory_space<vmem>>, %arg1: memref<256x4xf32, #tpu.memory_space<vmem>>, %arg2: memref<256x1xf32, #tpu.memory_space<vmem>>, %arg3: memref<304x128xf32, #tpu.memory_space<vmem>>, %arg4: memref<256x4xf32, #tpu.memory_space<vmem>>) attributes {dimension_semantics = [], scalar_prefetch = 0 : i64, scratch_operands = 0 : i64, tpu.core_type = #tpu.core_type<tc>} {
    %c0 = arith.constant 0 : index
    %c0_0 = arith.constant 0 : index
    %0 = vector.load %arg0[%c0, %c0_0] : memref<256x4xf32, #tpu.memory_space<vmem>>, vector<256x4xf32>
    %c8 = arith.constant 8 : index
    %c0_1 = arith.constant 0 : index
    %1 = vector.load %arg3[%c8, %c0_1] : memref<304x128xf32, #tpu.memory_space<vmem>>, vector<4x72xf32>
    %cst = arith.constant dense<0.000000e+00> : vector<256x72xf32>
    %2 = tpu.matmul %0, %1, %cst {dimension_numbers = #tpu.dot_dimension_numbers<[1], [0], [0], [1], [0, 0, 1, 1], [], []>} : vector<256x4xf32>, vector<4x72xf32>, vector<256x72xf32> -> vector<256x72xf32>
    %c0_2 = arith.constant 0 : index
    %c0_3 = arith.constant 0 : index
    %3 = vector.load %arg1[%c0_2, %c0_3] : memref<256x4xf32, #tpu.memory_space<vmem>>, vector<256x4xf32>
    %c16 = arith.constant 16 : index
    %c0_4 = arith.constant 0 : index
    %4 = vector.load %arg3[%c16, %c0_4] : memref<304x128xf32, #tpu.memory_space<vmem>>, vector<4x72xf32>
    %cst_5 = arith.constant dense<0.000000e+00> : vector<256x72xf32>
    %5 = tpu.matmul %3, %4, %cst_5 {dimension_numbers = #tpu.dot_dimension_numbers<[1], [0], [0], [1], [0, 0, 1, 1], [], []>} : vector<256x4xf32>, vector<4x72xf32>, vector<256x72xf32> -> vector<256x72xf32>
    %6 = arith.addf %2, %5 : vector<256x72xf32>
    %c0_6 = arith.constant 0 : index
    %c0_7 = arith.constant 0 : index
    %7 = vector.load %arg2[%c0_6, %c0_7] : memref<256x1xf32, #tpu.memory_space<vmem>>, vector<256x1xf32>
    %c24 = arith.constant 24 : index
    %c0_8 = arith.constant 0 : index
    %8 = vector.load %arg3[%c24, %c0_8] : memref<304x128xf32, #tpu.memory_space<vmem>>, vector<1x72xf32>
    %9 = vector.broadcast %7 : vector<256x1xf32> to vector<256x72xf32>
    %10 = vector.broadcast %8 : vector<1x72xf32> to vector<256x72xf32>
    %11 = arith.mulf %9, %10 : vector<256x72xf32>
    %12 = arith.addf %6, %11 : vector<256x72xf32>
    %c32 = arith.constant 32 : index
    %c0_9 = arith.constant 0 : index
    %13 = vector.load %arg3[%c32, %c0_9] : memref<304x128xf32, #tpu.memory_space<vmem>>, vector<1x72xf32>
    %14 = vector.broadcast %13 : vector<1x72xf32> to vector<256x72xf32>
    %15 = arith.addf %12, %14 : vector<256x72xf32>
    %cst_10 = arith.constant 0.000000e+00 : f32
    %16 = vector.broadcast %cst_10 : f32 to vector<256x72xf32>
    %17 = arith.maximumf %15, %16 : vector<256x72xf32>
    %c40 = arith.constant 40 : index
    %c0_11 = arith.constant 0 : index
    %18 = vector.load %arg3[%c40, %c0_11] : memref<304x128xf32, #tpu.memory_space<vmem>>, vector<72x72xf32>
    %cst_12 = arith.constant dense<0.000000e+00> : vector<256x72xf32>
    %19 = tpu.matmul %17, %18, %cst_12 {dimension_numbers = #tpu.dot_dimension_numbers<[1], [0], [0], [1], [0, 0, 1, 1], [], []>} : vector<256x72xf32>, vector<72x72xf32>, vector<256x72xf32> -> vector<256x72xf32>
    %cst_13 = arith.constant 0.000000e+00 : f32
    %20 = vector.broadcast %cst_13 : f32 to vector<256x72xf32>
    %21 = arith.maximumf %19, %20 : vector<256x72xf32>
    %c112 = arith.constant 112 : index
    %c0_14 = arith.constant 0 : index
    %22 = vector.load %arg3[%c112, %c0_14] : memref<304x128xf32, #tpu.memory_space<vmem>>, vector<72x80xf32>
    %cst_15 = arith.constant dense<0.000000e+00> : vector<256x80xf32>
    %23 = tpu.matmul %21, %22, %cst_15 {dimension_numbers = #tpu.dot_dimension_numbers<[1], [0], [0], [1], [0, 0, 1, 1], [], []>} : vector<256x72xf32>, vector<72x80xf32>, vector<256x80xf32> -> vector<256x80xf32>
    %24 = vector.extract_strided_slice %23 {offsets = [0, 72], sizes = [256, 4], strides = [1, 1]} : vector<256x80xf32> to vector<256x4xf32>
    %25 = math.tanh %24 : vector<256x4xf32>
    %cst_16 = arith.constant 0.000000e+00 : f32
    %26 = vector.broadcast %cst_16 : f32 to vector<256x80xf32>
    %27 = arith.maximumf %23, %26 : vector<256x80xf32>
    %c184 = arith.constant 184 : index
    %c0_17 = arith.constant 0 : index
    %28 = vector.load %arg3[%c184, %c0_17] : memref<304x128xf32, #tpu.memory_space<vmem>>, vector<80x40xf32>
    %cst_18 = arith.constant dense<0.000000e+00> : vector<256x40xf32>
    %29 = tpu.matmul %27, %28, %cst_18 {dimension_numbers = #tpu.dot_dimension_numbers<[1], [0], [0], [1], [0, 0, 1, 1], [], []>} : vector<256x80xf32>, vector<80x40xf32>, vector<256x40xf32> -> vector<256x40xf32>
    %cst_19 = arith.constant 0.000000e+00 : f32
    %30 = vector.broadcast %cst_19 : f32 to vector<256x40xf32>
    %31 = arith.maximumf %29, %30 : vector<256x40xf32>
    %c264 = arith.constant 264 : index
    %c0_20 = arith.constant 0 : index
    %32 = vector.load %arg3[%c264, %c0_20] : memref<304x128xf32, #tpu.memory_space<vmem>>, vector<40x8xf32>
    %cst_21 = arith.constant dense<0.000000e+00> : vector<256x8xf32>
    %33 = tpu.matmul %31, %32, %cst_21 {dimension_numbers = #tpu.dot_dimension_numbers<[1], [0], [0], [1], [0, 0, 1, 1], [], []>} : vector<256x40xf32>, vector<40x8xf32>, vector<256x8xf32> -> vector<256x8xf32>
    %34 = vector.extract_strided_slice %33 {offsets = [0, 0], sizes = [256, 4], strides = [1, 1]} : vector<256x8xf32> to vector<256x4xf32>
    %35 = math.tanh %34 : vector<256x4xf32>
    %c0_22 = arith.constant 0 : index
    %c0_23 = arith.constant 0 : index
    %36 = vector.load %arg2[%c0_22, %c0_23] : memref<256x1xf32, #tpu.memory_space<vmem>>, vector<256x1xf32>
    %c0_24 = arith.constant 0 : index
    %c0_25 = arith.constant 0 : index
    %37 = vector.load %arg3[%c0_24, %c0_25] : memref<304x128xf32, #tpu.memory_space<vmem>>, vector<1x4xf32>
    %38 = vector.broadcast %36 : vector<256x1xf32> to vector<256x4xf32>
    %39 = vector.broadcast %37 : vector<1x4xf32> to vector<256x4xf32>
    %40 = arith.mulf %38, %39 : vector<256x4xf32>
    %41 = math.tanh %40 : vector<256x4xf32>
    %c0_26 = arith.constant 0 : index
    %c0_27 = arith.constant 0 : index
    %42 = vector.load %arg0[%c0_26, %c0_27] : memref<256x4xf32, #tpu.memory_space<vmem>>, vector<256x4xf32>
    %43 = arith.mulf %25, %35 : vector<256x4xf32>
    %44 = arith.mulf %41, %43 : vector<256x4xf32>
    %45 = arith.addf %42, %44 : vector<256x4xf32>
    %c0_28 = arith.constant 0 : index
    %c0_29 = arith.constant 0 : index
    %46 = vector.load %arg4[%c0_28, %c0_29] : memref<256x4xf32, #tpu.memory_space<vmem>>, vector<256x4xf32>
    tpu.vector_store %arg4[%c0_28, %c0_29], %45 {strides = array<i32>} : memref<256x4xf32, #tpu.memory_space<vmem>>, vector<256x4xf32>,
    return
  }
}

</mosaic_0001>

<bundles_post_ra>
// kernel: tpu_custom_call.1
= control target key start
LH: loop header
LB: loop body
LE: loop exit
PB: predicated region body
PF: predicated region fallthrough
CT: control target
= control target key end

     0   :  { %vm180_vm0 = vcmask 1043456   ;;  %vm83_vm1 = vcmask 31744   ;;  %v4011_v3 = vmov 0   ;;  %vm1072_vm2 = vcmask 588800   ;;  %s4013_s16 = smov 56   ;;  %s5283_s3 = inlined_call_operand.vmem [shape: f32[304,128], index: 3, kind: input, shape index: {}]   ;;  %s5284_s1 = inlined_call_operand.vmem [shape: f32[256,4], index: 1, kind: input, shape index: {}]   ;;  %s5285_s0 = inlined_call_operand.vmem [shape: f32[256,4], index: 0, kind: input, shape index: {}]   ;;  %s5286_s2 = inlined_call_operand.vmem [shape: f32[256,1], index: 2, kind: input, shape index: {}]   ;;  %s5287_s4 = inlined_call_operand.vmem [shape: f32[256,4], index: 4, kind: output, shape index: {}]  }
   0x1   :  { %v82_v0 = vld [vmem:[%s5283_s3 + $0x10] sm:$0xf]  ;;  %v49_v1 = vld [vmem:[%s5283_s3 + $0x8] sm:$0xf]  ;;  %v50_v2 = vld [vmem:[%s5284_s1] sm:$0xff]  ;;  %3785 = vset.pattern.permute.xlu0 %v4011_v3  ;;  %3786 = vset.pattern.permute.xlu1 %v4011_v3  ;;  %vm1830_vm3 = vcmask 654336  }
   0x2   :  { %3424 = vmatprep.subr.msk.mxu0 %vm180_vm0, %v82_v0  ;;  %3474 = vmatprep.subr.msk.mxu1 %vm180_vm0, %v49_v1  ;;  %v17_v4 = vld [vmem:[%s5285_s0] sm:$0xff]  ;;  %v51_v5 = vld [vmem:[%s5284_s1 + $0x8] sm:$0xff]  ;;  %v52_v7 = vld [vmem:[%s5284_s1 + $0x10] sm:$0xff]  ;;  %vm2189_vm4 = vcmask 326656  }
   0x3   :  { %v18_v6 = vld [vmem:[%s5285_s0 + $0x8] sm:$0xff]  ;;  %3425 = vmatpush3.msk.msra.mxu0 %vm180_vm0, %v82_v0  ;;  %3426 = vmatprep.mubr.msk.f32.mxu0 %vm83_vm1, %v50_v2  ;;  %v19_v8 = vld [vmem:[%s5285_s0 + $0x10] sm:$0xff]  ;;  %v733_v9 = vld [vmem:[%s5286_s2] sm:$0xff] }
   0x4   :  { %3475 = vmatpush3.msk.msra.mxu1 %vm180_vm0, %v49_v1  ;;  %3476 = vmatprep.mubr.msk.f32.mxu1 %vm83_vm1, %v17_v4  ;;  %v53_v10 = vld [vmem:[%s5284_s1 + $0x18] sm:$0xff]  ;;  %v735_v12 = vld [vmem:[%s5286_s2 + $0x10] sm:$0xff]  ;;  %v54_v13 = vld [vmem:[%s5284_s1 + $0x20] sm:$0xff] }
   0x5   :  { %3427 = vmatmul.mubr.msk.f32.vlgmr.msra.gmra.mxu0 %vm83_vm1, %v51_v5  ;;  %3477 = vmatmul.mubr.msk.f32.vlgmr.msra.gmra.mxu1 %vm83_vm1, %v18_v6  ;;  %v20_v11 = vld [vmem:[%s5285_s0 + $0x18] sm:$0xff]  ;;  %v21_v14 = vld [vmem:[%s5285_s0 + $0x20] sm:$0xff]  ;;  %v734_v15 = vld [vmem:[%s5286_s2 + $0x8] sm:$0xff] }
   0x6   :  { %3429 = vmatprep.mubr.msk.f32.mxu0 %vm83_vm1, %v52_v7  ;;  %3479 = vmatprep.mubr.msk.f32.mxu1 %vm83_vm1, %v19_v8  ;;  %v736_v16 = vld [vmem:[%s5286_s2 + $0x18] sm:$0xff]  ;;  %v55_v17 = vld [vmem:[%s5284_s1 + $0x28] sm:$0xff]  ;;  %v56_v19 = vld [vmem:[%s5284_s1 + $0x30] sm:$0xff] }
   0x7   :  { %768 = vperm.xlu0 %3785, %v733_v9   ;;  %778 = vperm.xlu1 %3786, %v735_v12   ;;  %v22_v18 = vld [vmem:[%s5285_s0 + $0x28] sm:$0xff]  ;;  %v23_v20 = vld [vmem:[%s5285_s0 + $0x30] sm:$0xff]  ;;  %v737_v21 = vld [vmem:[%s5286_s2 + $0x20] sm:$0xff] }
   0x8   :  { %v738_v22 = vld [vmem:[%s5286_s2 + $0x28] sm:$0xff]  ;;  %v57_v23 = vld [vmem:[%s5284_s1 + $0x38] sm:$0xff]  ;;  %v58_v25 = vld [vmem:[%s5284_s1 + $0x40] sm:$0xff] }
   0x9   :  { %3430 = vmatmul.mubr.msk.f32.gmra.mxu0 %vm83_vm1, %v53_v10  ;;  %3480 = vmatmul.mubr.msk.f32.gmra.mxu1 %vm83_vm1, %v20_v11  ;;  %v24_v24 = vld [vmem:[%s5285_s0 + $0x38] sm:$0xff]  ;;  %v25_v26 = vld [vmem:[%s5285_s0 + $0x40] sm:$0xff]  ;;  %v739_v27 = vld [vmem:[%s5286_s2 + $0x30] sm:$0xff] }
   0xa   :  { %3432 = vmatprep.mubr.msk.f32.mxu0 %vm83_vm1, %v54_v13  ;;  %3482 = vmatprep.mubr.msk.f32.mxu1 %vm83_vm1, %v21_v14  ;;  %v740_v28 = vld [vmem:[%s5286_s2 + $0x38] sm:$0xff]  ;;  %v59_v29 = vld [vmem:[%s5284_s1 + $0x48] sm:$0xff]  ;;  %v60_v31 = vld [vmem:[%s5284_s1 + $0x50] sm:$0xff] }
   0xb   :  { %773 = vperm.xlu0 %3785, %v734_v15   ;;  %783 = vperm.xlu1 %3786, %v736_v16   ;;  %v26_v30 = vld [vmem:[%s5285_s0 + $0x48] sm:$0xff]  ;;  %v27_v32 = vld [vmem:[%s5285_s0 + $0x50] sm:$0xff]  ;;  %v741_v33 = vld [vmem:[%s5286_s2 + $0x40] sm:$0xff] }
   0xc   :  { %v742_v34 = vld [vmem:[%s5286_s2 + $0x48] sm:$0xff]  ;;  %v61_v35 = vld [vmem:[%s5284_s1 + $0x58] sm:$0xff]  ;;  %v62_v37 = vld [vmem:[%s5284_s1 + $0x60] sm:$0xff] }
   0xd   :  { %3433 = vmatmul.mubr.msk.f32.gmra.mxu0 %vm83_vm1, %v55_v17  ;;  %3483 = vmatmul.mubr.msk.f32.gmra.mxu1 %vm83_vm1, %v22_v18  ;;  %v28_v36 = vld [vmem:[%s5285_s0 + $0x58] sm:$0xff]  ;;  %v29_v38 = vld [vmem:[%s5285_s0 + $0x60] sm:$0xff]  ;;  %v743_v39 = vld [vmem:[%s5286_s2 + $0x50] sm:$0xff] }
   0xe   :  { %3435 = vmatprep.mubr.msk.f32.mxu0 %vm83_vm1, %v56_v19  ;;  %3485 = vmatprep.mubr.msk.f32.mxu1 %vm83_vm1, %v23_v20  ;;  %v744_v40 = vld [vmem:[%s5286_s2 + $0x58] sm:$0xff]  ;;  %v63_v41 = vld [vmem:[%s5284_s1 + $0x68] sm:$0xff]  ;;  %v64_v43 = vld [vmem:[%s5284_s1 + $0x70] sm:$0xff] }
   0xf   :  { %788 = vperm.xlu0 %3785, %v737_v21   ;;  %793 = vperm.xlu1 %3786, %v738_v22   ;;  %v30_v42 = vld [vmem:[%s5285_s0 + $0x68] sm:$0xff]  ;;  %v31_v44 = vld [vmem:[%s5285_s0 + $0x70] sm:$0xff]  ;;  %v745_v45 = vld [vmem:[%s5286_s2 + $0x60] sm:$0xff] }
  0x10   :  { %v746_v46 = vld [vmem:[%s5286_s2 + $0x68] sm:$0xff]  ;;  %v65_v47 = vld [vmem:[%s5284_s1 + $0x78] sm:$0xff]  ;;  %v66_v49 = vld [vmem:[%s5284_s1 + $0x80] sm:$0xff] }
  0x11   :  { %3436 = vmatmul.mubr.msk.f32.gmra.mxu0 %vm83_vm1, %v57_v23  ;;  %3486 = vmatmul.mubr.msk.f32.gmra.mxu1 %vm83_vm1, %v24_v24  ;;  %v32_v48 = vld [vmem:[%s5285_s0 + $0x78] sm:$0xff]  ;;  %v33_v50 = vld [vmem:[%s5285_s0 + $0x80] sm:$0xff]  ;;  %v747_v51 = vld [vmem:[%s5286_s2 + $0x70] sm:$0xff] }
  0x12   :  { %3438 = vmatprep.mubr.msk.f32.mxu0 %vm83_vm1, %v58_v25  ;;  %3488 = vmatprep.mubr.msk.f32.mxu1 %vm83_vm1, %v25_v26  ;;  %v748_v52 = vld [vmem:[%s5286_s2 + $0x78] sm:$0xff]  ;;  %v67_v53 = vld [vmem:[%s5284_s1 + $0x88] sm:$0xff]  ;;  %v68_v56 = vld [vmem:[%s5284_s1 + $0x90] sm:$0xff] }
  0x13   :  { %798 = vperm.xlu0 %3785, %v739_v27   ;;  %803 = vperm.xlu1 %3786, %v740_v28   ;;  %v34_v54 = vld [vmem:[%s5285_s0 + $0x88] sm:$0xff]  ;;  %v35_v57 = vld [vmem:[%s5285_s0 + $0x90] sm:$0xff]  ;;  %v749_v58 = vld [vmem:[%s5286_s2 + $0x80] sm:$0xff] }
  0x14   :  { %v1071_v55 = vld [vmem:[%s5283_s3 + $0x68] sm:$0xff]  ;;  %v69_v60 = vld [vmem:[%s5284_s1 + $0x98] sm:$0xff]  ;;  %v70_v62 = vld [vmem:[%s5284_s1 + $0xa0] sm:$0xff] }
  0x15   :  { %3439 = vmatmul.mubr.msk.f32.gmra.mxu0 %vm83_vm1, %v59_v29  ;;  %3489 = vmatmul.mubr.msk.f32.gmra.mxu1 %vm83_vm1, %v26_v30  ;;  %v750_v59 = vld [vmem:[%s5286_s2 + $0x88] sm:$0xff]  ;;  %v36_v61 = vld [vmem:[%s5285_s0 + $0x98] sm:$0xff]  ;;  %v37_v63 = vld [vmem:[%s5285_s0 + $0xa0] sm:$0xff] }
  0x16   :  { %3441 = vmatprep.mubr.msk.f32.mxu0 %vm83_vm1, %v60_v31  ;;  %3491 = vmatprep.mubr.msk.f32.mxu1 %vm83_vm1, %v27_v32  ;;  %v751_v0 = vld [vmem:[%s5286_s2 + $0x90] sm:$0xff]  ;;  %v752_v1 = vld [vmem:[%s5286_s2 + $0x98] sm:$0xff]  ;;  %v1070_v2 = vld [vmem:[%s5283_s3 + $0x60] sm:$0xff] }
  0x17   :  { %808 = vperm.xlu0 %3785, %v741_v33   ;;  %813 = vperm.xlu1 %3786, %v742_v34   ;;  %v71_v3 = vld [vmem:[%s5284_s1 + $0xa8] sm:$0xff]  ;;  %v72_v5 = vld [vmem:[%s5284_s1 + $0xb0] sm:$0xff]  ;;  %v753_v7 = vld [vmem:[%s5286_s2 + $0xa0] sm:$0xff] }
  0x18   :  { %3524 = vmatprep.subr.mxu0 %v1071_v55  ;;  %v38_v4 = vld [vmem:[%s5285_s0 + $0xa8] sm:$0xff]  ;;  %v39_v6 = vld [vmem:[%s5285_s0 + $0xb0] sm:$0xff]  ;;  %v73_v9 = vld [vmem:[%s5284_s1 + $0xb8] sm:$0xff] }
  0x19   :  { %3442 = vmatmul.mubr.msk.f32.gmra.mxu0 %vm83_vm1, %v61_v35  ;;  %3492 = vmatmul.mubr.msk.f32.gmra.mxu1 %vm83_vm1, %v28_v36  ;;  %v754_v8 = vld [vmem:[%s5286_s2 + $0xa8] sm:$0xff]  ;;  %v40_v10 = vld [vmem:[%s5285_s0 + $0xb8] sm:$0xff]  ;;  %v74_v11 = vld [vmem:[%s5284_s1 + $0xc0] sm:$0xff] }
  0x1a   :  { %3444 = vmatprep.mubr.msk.f32.mxu0 %vm83_vm1, %v62_v37  ;;  %3494 = vmatprep.mubr.msk.f32.mxu1 %vm83_vm1, %v29_v38  ;;  %v41_v12 = vld [vmem:[%s5285_s0 + $0xc0] sm:$0xff]  ;;  %v755_v13 = vld [vmem:[%s5286_s2 + $0xb0] sm:$0xff]  ;;  %v756_v14 = vld [vmem:[%s5286_s2 + $0xb8] sm:$0xff] }
  0x1b   :  { %818 = vperm.xlu0 %3785, %v743_v39   ;;  %823 = vperm.xlu1 %3786, %v744_v40   ;;  %v1069_v15 = vld [vmem:[%s5283_s3 + $0x58] sm:$0xff]  ;;  %v75_v16 = vld [vmem:[%s5284_s1 + $0xc8] sm:$0xff]  ;;  %v76_v18 = vld [vmem:[%s5284_s1 + $0xd0] sm:$0xff] }
  0x1c   :  { %3525 = vmatpush3.msra.mxu0 %v1071_v55  ;;  %v42_v17 = vld [vmem:[%s5285_s0 + $0xc8] sm:$0xff]  ;;  %v43_v19 = vld [vmem:[%s5285_s0 + $0xd0] sm:$0xff]  ;;  %v757_v20 = vld [vmem:[%s5286_s2 + $0xc0] sm:$0xff] }
  0x1d   :  { %3445 = vmatmul.mubr.msk.f32.gmra.mxu0 %vm83_vm1, %v63_v41  ;;  %3495 = vmatmul.mubr.msk.f32.gmra.mxu1 %vm83_vm1, %v30_v42  ;;  %v758_v21 = vld [vmem:[%s5286_s2 + $0xc8] sm:$0xff]  ;;  %v77_v22 = vld [vmem:[%s5284_s1 + $0xd8] sm:$0xff]  ;;  %v78_v24 = vld [vmem:[%s5284_s1 + $0xe0] sm:$0xff] }
  0x1e   :  { %3447 = vmatprep.mubr.msk.f32.mxu0 %vm83_vm1, %v64_v43  ;;  %3497 = vmatprep.mubr.msk.f32.mxu1 %vm83_vm1, %v31_v44  ;;  %v44_v23 = vld [vmem:[%s5285_s0 + $0xd8] sm:$0xff]  ;;  %v45_v25 = vld [vmem:[%s5285_s0 + $0xe0] sm:$0xff]  ;;  %v759_v26 = vld [vmem:[%s5286_s2 + $0xd0] sm:$0xff] }
  0x1f   :  { %828 = vperm.xlu0 %3785, %v745_v45   ;;  %833 = vperm.xlu1 %3786, %v746_v46   ;;  %v760_v27 = vld [vmem:[%s5286_s2 + $0xd8] sm:$0xff]  ;;  %v1068_v28 = vld [vmem:[%s5283_s3 + $0x50] sm:$0xff]  ;;  %v79_v29 = vld [vmem:[%s5284_s1 + $0xe8] sm:$0xff] }
  0x20   :  { %3526 = vmatprep.subr.mxu0 %v1070_v2  ;;  %v46_v30 = vld [vmem:[%s5285_s0 + $0xe8] sm:$0xff]  ;;  %v80_v31 = vld [vmem:[%s5284_s1 + $0xf0] sm:$0xff]  ;;  %v761_v33 = vld [vmem:[%s5286_s2 + $0xe0] sm:$0xff] }
  0x21   :  { %3448 = vmatmul.mubr.msk.f32.gmra.mxu0 %vm83_vm1, %v65_v47  ;;  %3498 = vmatmul.mubr.msk.f32.gmra.mxu1 %vm83_vm1, %v32_v48  ;;  %v47_v32 = vld [vmem:[%s5285_s0 + $0xf0] sm:$0xff]  ;;  %v762_v34 = vld [vmem:[%s5286_s2 + $0xe8] sm:$0xff]  ;;  %v81_v35 = vld [vmem:[%s5284_s1 + $0xf8] sm:$0xff] }
  0x22   :  { %3450 = vmatprep.mubr.msk.f32.mxu0 %vm83_vm1, %v66_v49  ;;  %3500 = vmatprep.mubr.msk.f32.mxu1 %vm83_vm1, %v33_v50  ;;  %v48_v36 = vld [vmem:[%s5285_s0 + $0xf8] sm:$0xff]  ;;  %v1067_v37 = vld [vmem:[%s5283_s3 + $0x48] sm:$0xff]  ;;  %v763_v38 = vld [vmem:[%s5286_s2 + $0xf0] sm:$0xff] }
  0x23   :  { %838 = vperm.xlu0 %3785, %v747_v51   ;;  %843 = vperm.xlu1 %3786, %v748_v52   ;;  %v764_v39 = vld [vmem:[%s5286_s2 + $0xf8] sm:$0xff]  ;;  %v1066_v40 = vld [vmem:[%s5283_s3 + $0x40] sm:$0xff]  ;;  %v1064_v42 = vld [vmem:[%s5283_s3 + $0x30] sm:$0xff]  ;;  %s4012_s2 = smov 72  }
  0x24   :  { %3527 = vmatpush3.msra.mxu0 %v1070_v2  ;;  %v1065_v41 = vld [vmem:[%s5283_s3 + $0x38] sm:$0xff]  ;;  %v1063_v43 = vld [vmem:[%s5283_s3 + $0x28] sm:$0xff]  ;;  %v1434_v44 = vld [vmem:[%s5283_s3 + $0xb0] sm:$0xff] }
  0x25   :  { %3451 = vmatmul.mubr.msk.f32.gmra.mxu0 %vm83_vm1, %v67_v53  ;;  %3501 = vmatmul.mubr.msk.f32.gmra.mxu1 %vm83_vm1, %v34_v54  ;;  %v1433_v45 = vld [vmem:[%s5283_s3 + $0xa8] sm:$0xff]  ;;  %v1432_v46 = vld [vmem:[%s5283_s3 + $0xa0] sm:$0xff]  ;;  %v1431_v47 = vld [vmem:[%s5283_s3 + $0x98] sm:$0xff] }
  0x26   :  { %3453 = vmatprep.mubr.msk.f32.mxu0 %vm83_vm1, %v68_v56  ;;  %3503 = vmatprep.mubr.msk.f32.mxu1 %vm83_vm1, %v35_v57  ;;  %v1430_v48 = vld [vmem:[%s5283_s3 + $0x90] sm:$0xff]  ;;  %v1429_v49 = vld [vmem:[%s5283_s3 + $0x88] sm:$0xff]  ;;  %v1428_v50 = vld [vmem:[%s5283_s3 + $0x80] sm:$0xff] }
  0x27   :  { %848 = vperm.xlu0 %3785, %v749_v58   ;;  %853 = vperm.xlu1 %3786, %v750_v59   ;;  %v1427_v51 = vld [vmem:[%s5283_s3 + $0x78] sm:$0xff]  ;;  %v1426_v52 = vld [vmem:[%s5283_s3 + $0x70] sm:$0xff] }
  0x28   :  { %3528 = vmatprep.subr.mxu0 %v1069_v15  ;;  %3590 = vmatprep.subr.mxu1 %v1434_v44 }
  0x29   :  { %3454 = vmatmul.mubr.msk.f32.gmra.mxu0 %vm83_vm1, %v69_v60  ;;  %3504 = vmatmul.mubr.msk.f32.gmra.mxu1 %vm83_vm1, %v36_v61 }
  0x2a   :  { %3456 = vmatprep.mubr.msk.f32.mxu0 %vm83_vm1, %v70_v62  ;;  %3506 = vmatprep.mubr.msk.f32.mxu1 %vm83_vm1, %v37_v63  ;;  %v4478_v63 = vld [vmem:[%s5283_s3 + $0x18] ss:$0 sm:$0xff] }
  0x2b   :  { %858 = vperm.xlu0 %3785, %v751_v0   ;;  %863 = vperm.xlu1 %3786, %v752_v1  }
  0x2c   :  { %3529 = vmatpush3.msra.mxu0 %v1069_v15  ;;  %3591 = vmatpush3.msra.mxu1 %v1434_v44 }
  0x2d   :  { %3457 = vmatmul.mubr.msk.f32.gmra.mxu0 %vm83_vm1, %v71_v3  ;;  %3507 = vmatmul.mubr.msk.f32.gmra.mxu1 %vm83_vm1, %v38_v4 }
  0x2e   :  { %3459 = vmatprep.mubr.msk.f32.mxu0 %vm83_vm1, %v72_v5  ;;  %3509 = vmatprep.mubr.msk.f32.mxu1 %vm83_vm1, %v39_v6 }
  0x2f   :  { %868 = vperm.xlu0 %3785, %v753_v7   ;;  %873 = vperm.xlu1 %3786, %v754_v8  }
  0x30   :  { %3530 = vmatprep.subr.mxu0 %v1068_v28  ;;  %3592 = vmatprep.subr.mxu1 %v1433_v45 }
  0x31   :  { %3460 = vmatmul.mubr.msk.f32.gmra.mxu0 %vm83_vm1, %v73_v9  ;;  %3510 = vmatmul.mubr.msk.f32.gmra.mxu1 %vm83_vm1, %v40_v10 }
  0x32   :  { %3462 = vmatprep.mubr.msk.f32.mxu0 %vm83_vm1, %v74_v11  ;;  %3512 = vmatprep.mubr.msk.f32.mxu1 %vm83_vm1, %v41_v12  ;;  %v4495_v12 = vld [vmem:[%s5283_s3 + $0x20] ss:$0 sm:$0xff] }
  0x33   :  { %878 = vperm.xlu0 %3785, %v755_v13   ;;  %883 = vperm.xlu1 %3786, %v756_v14  }
  0x34   :  { %3531 = vmatpush3.msra.mxu0 %v1068_v28  ;;  %3593 = vmatpush3.msra.mxu1 %v1433_v45 }
  0x35   :  { %3463 = vmatmul.mubr.msk.f32.gmra.mxu0 %vm83_vm1, %v75_v16  ;;  %3513 = vmatmul.mubr.msk.f32.gmra.mxu1 %vm83_vm1, %v42_v17 }
  0x36   :  { %3465 = vmatprep.mubr.msk.f32.mxu0 %vm83_vm1, %v76_v18  ;;  %3515 = vmatprep.mubr.msk.f32.mxu1 %vm83_vm1, %v43_v19 }
  0x37   :  { %888 = vperm.xlu0 %3785, %v757_v20   ;;  %893 = vperm.xlu1 %3786, %v758_v21  }
  0x38   :  { %3532 = vmatprep.subr.mxu0 %v1067_v37  ;;  %3594 = vmatprep.subr.mxu1 %v1432_v46 }
  0x39   :  { %3466 = vmatmul.mubr.msk.f32.gmra.mxu0 %vm83_vm1, %v77_v22  ;;  %3516 = vmatmul.mubr.msk.f32.gmra.mxu1 %vm83_vm1, %v44_v23 }
  0x3a   :  { %3468 = vmatprep.mubr.msk.f32.mxu0 %vm83_vm1, %v78_v24  ;;  %3518 = vmatprep.mubr.msk.f32.mxu1 %vm83_vm1, %v45_v25 }
  0x3b   :  { %898 = vperm.xlu0 %3785, %v759_v26   ;;  %903 = vperm.xlu1 %3786, %v760_v27  }
  0x3c   :  { %3533 = vmatpush3.msra.mxu0 %v1067_v37  ;;  %3595 = vmatpush3.msra.mxu1 %v1432_v46 }
  0x3d   :  { %3469 = vmatmul.mubr.msk.f32.gmra.mxu0 %vm83_vm1, %v79_v29  ;;  %3519 = vmatmul.mubr.msk.f32.gmra.mxu1 %vm83_vm1, %v46_v30 }
  0x3e   :  { %3471 = vmatprep.mubr.msk.f32.mxu0 %vm83_vm1, %v80_v31  ;;  %3521 = vmatprep.mubr.msk.f32.mxu1 %vm83_vm1, %v47_v32 }
  0x3f   :  { %908 = vperm.xlu0 %3785, %v761_v33   ;;  %913 = vperm.xlu1 %3786, %v762_v34  }
  0x40   :  { %3534 = vmatprep.subr.mxu0 %v1066_v40  ;;  %3596 = vmatprep.subr.mxu1 %v1431_v47 }
  0x41   :  { %3472 = vmatmul.mubr.msk.f32.gmra.mxu0 %vm83_vm1, %v81_v35  ;;  %3522 = vmatmul.mubr.msk.f32.gmra.mxu1 %vm83_vm1, %v48_v36 }
  0x42   :  { %3535 = vmatpush3.msra.mxu0 %v1066_v40  ;;  %3597 = vmatpush3.msra.mxu1 %v1431_v47 }
  0x43   :  { %918 = vperm.xlu0 %3785, %v763_v38   ;;  %923 = vperm.xlu1 %3786, %v764_v39  }
  0x44   :  { %3536 = vmatprep.subr.mxu0 %v1065_v41  ;;  %3598 = vmatprep.subr.mxu1 %v1430_v48 }
  0x45   :  { %3537 = vmatpush3.msra.mxu0 %v1065_v41  ;;  %3599 = vmatpush3.msra.mxu1 %v1430_v48 }
  0x46   :  { %3538 = vmatprep.subr.mxu0 %v1064_v42  ;;  %3600 = vmatprep.subr.mxu1 %v1429_v49 }
  0x47   :  { %3539 = vmatpush3.msra.mxu0 %v1064_v42  ;;  %3601 = vmatpush3.msra.mxu1 %v1429_v49 }
  0x48   :  { %3540 = vmatprep.subr.mxu0 %v1063_v43  ;;  %3602 = vmatprep.subr.mxu1 %v1428_v50 }
  0x49   :  { %3541 = vmatpush3.msra.mxu0 %v1063_v43  ;;  %3603 = vmatpush3.msra.mxu1 %v1428_v50 }
  0x4a   :  { %3604 = vmatprep.subr.mxu1 %v1427_v51 }
  0x4b   :  { %3605 = vmatpush3.msra.mxu1 %v1427_v51 }
  0x4c   :  { %3606 = vmatprep.subr.mxu1 %v1426_v52 }
  0x4d   :  { %3607 = vmatpush3.msra.mxu1 %v1426_v52 }
  0x82   :  { %v4455_v53 = vpop.permute.xlu1 %778  ;;  %v4457_v54 = vpop.permute.xlu0 %768 }
  0x83   :  { %v930_v8 = vmul.f32 %v4478_v63, %v4457_v54  ;;  %v932_v22 = vmul.f32 %v4478_v63, %v4455_v53 }
  0x86   :  { %v4459_v55 = vpop.permute.xlu1 %783  ;;  %v4461_v56 = vpop.permute.xlu0 %773 }
  0x87   :  { %v931_v1 = vmul.f32 %v4478_v63, %v4461_v56  ;;  %v933_v9 = vmul.f32 %v4478_v63, %v4459_v55 }
  0x8a   :  { %v4463_v57 = vpop.permute.xlu1 %793  ;;  %v4465_v58 = vpop.permute.xlu0 %788 }
  0x8b   :  { %v935_v28 = vmul.f32 %v4478_v63, %v4463_v57  ;;  %v934_v37 = vmul.f32 %v4478_v63, %v4465_v58 }
  0x8e   :  { %v4467_v59 = vpop.permute.xlu1 %803  ;;  %v4469_v60 = vpop.permute.xlu0 %798 }
  0x8f   :  { %v937_v44 = vmul.f32 %v4478_v63, %v4467_v59  ;;  %v936_v52 = vmul.f32 %v4478_v63, %v4469_v60 }
  0x92   :  { %v4471_v61 = vpop.permute.xlu1 %813  ;;  %v4473_v62 = vpop.permute.xlu0 %808 }
  0x96   :  { %v4480_v0 = vpop.permute.xlu1 %823  ;;  %v4484_v2 = vpop.permute.xlu0 %818 }
  0x9a   :  { %v4490_v10 = vpop.permute.xlu1 %833  ;;  %v4497_v16 = vpop.permute.xlu0 %828 }
  0x9e   :  { %v4505_v29 = vpop.permute.xlu1 %843  ;;  %v4510_v38 = vpop.permute.xlu0 %838 }
  0xc5   :  { %v3428_v3 = vpop.f32.mrf.mxu0  ;;  %v3478_v4 = vpop.f32.mrf.mxu1 }
  0xc6   :  { %v580_v5 = vadd.f32 %v3478_v4, %v3428_v3 }
  0xc7   :  { %v250_v6 = vpop.f32.mrf.mxu0  ;;  %v574_v7 = vpop.f32.mrf.mxu1 }
  0xc8   :  { %v963_v11 = vadd.f32 %v931_v1, %v580_v5  ;;  %v575_v13 = vadd.f32 %v574_v7, %v250_v6  ;;  %v4520_v1 = vpop.permute.xlu1 %853 }
  0xc9   :  { %v3431_v14 = vpop.f32.mrf.mxu0  ;;  %v3481_v15 = vpop.f32.mrf.mxu1 }
  0xca   :  { %v962_v17 = vadd.f32 %v930_v8, %v575_v13  ;;  %v590_v18 = vadd.f32 %v3481_v15, %v3431_v14  ;;  %v1000_v19 = vadd.f32 %v4495_v12, %v963_v11  ;;  %v939_v8 = vmul.f32 %v4478_v63, %v4471_v61 }
  0xcb   :  { %v260_v20 = vpop.f32.mrf.mxu0  ;;  %v584_v21 = vpop.f32.mrf.mxu1 }
  0xcc   :  { %v999_v23 = vadd.f32 %v4495_v12, %v962_v17  ;;  %v965_v24 = vadd.f32 %v933_v9, %v590_v18  ;;  %v585_v25 = vadd.f32 %v584_v21, %v260_v20  ;;  %v1032_v33 = vmax.f32 %v1000_v19, 0.0  ;;  %v4527_v9 = vpop.permute.xlu0 %848 }
  0xcd   :  { %v3434_v26 = vpop.f32.mrf.mxu0  ;;  %v3484_v27 = vpop.f32.mrf.mxu1  ;;  %v938_v20 = vmul.f32 %v4478_v63, %v4473_v62 }
  0xce   :  { %v1031_v30 = vmax.f32 %v999_v23, 0.0  ;;  %v964_v31 = vadd.f32 %v932_v22, %v585_v25  ;;  %v600_v32 = vadd.f32 %v3484_v27, %v3434_v26  ;;  %v1002_v34 = vadd.f32 %v4495_v12, %v965_v24  ;;  %v4537_v27 = vpop.permute.xlu1 %863 }
  0xcf   :  { %v270_v35 = vpop.f32.mrf.mxu0  ;;  %v594_v36 = vpop.f32.mrf.mxu1  ;;  %v941_v26 = vmul.f32 %v4478_v63, %v4480_v0  ;;  %5302 = vst [vmem:[#allocation2_spill] sm:$0xff] %v4537_v27 }
  0xd0   :  { %v1001_v39 = vadd.f32 %v4495_v12, %v964_v31  ;;  %v967_v40 = vadd.f32 %v935_v28, %v600_v32  ;;  %v595_v41 = vadd.f32 %v594_v36, %v270_v35  ;;  %3542 = vmatprep.mubr.msk.f32.mxu0 %vm1072_vm2, %v1031_v30  ;;  %v1034_v48 = vmax.f32 %v1002_v34, 0.0 }
  0xd1   :  { %v3437_v42 = vpop.f32.mrf.mxu0  ;;  %v3487_v43 = vpop.f32.mrf.mxu1  ;;  %3543 = vmatmul.mubr.msk.f32.vlgmr.msra.gmra.mxu0 %vm1072_vm2, %v1032_v33  ;;  %v940_v36 = vmul.f32 %v4478_v63, %v4484_v2 }
  0xd2   :  { %v1033_v45 = vmax.f32 %v1001_v39, 0.0  ;;  %v966_v46 = vadd.f32 %v934_v37, %v595_v41  ;;  %v610_v47 = vadd.f32 %v3487_v43, %v3437_v42  ;;  %v1004_v49 = vadd.f32 %v4495_v12, %v967_v40  ;;  %v4542_v37 = vpop.permute.xlu0 %858 }
  0xd3   :  { %v280_v50 = vpop.f32.mrf.mxu0  ;;  %v604_v51 = vpop.f32.mrf.mxu1  ;;  %5303 = vst [vmem:[#allocation3_spill] sm:$0xff] %v4542_v37 }
  0xd4   :  { %v1003_v3 = vadd.f32 %v4495_v12, %v966_v46  ;;  %v969_v4 = vadd.f32 %v937_v44, %v610_v47  ;;  %v605_v5 = vadd.f32 %v604_v51, %v280_v50  ;;  %3545 = vmatprep.mubr.msk.f32.mxu0 %vm1072_vm2, %v1033_v45  ;;  %v1036_v15 = vmax.f32 %v1004_v49, 0.0 }
  0xd5   :  { %v3440_v6 = vpop.f32.mrf.mxu0  ;;  %v3490_v7 = vpop.f32.mrf.mxu1  ;;  %3546 = vmatmul.mubr.msk.f32.gmra.mxu0 %vm1072_vm2, %v1034_v48  ;;  %v943_v44 = vmul.f32 %v4478_v63, %v4490_v10 }
  0xd6   :  { %v1035_v11 = vmax.f32 %v1003_v3, 0.0  ;;  %v968_v13 = vadd.f32 %v936_v52, %v605_v5  ;;  %v620_v14 = vadd.f32 %v3490_v7, %v3440_v6  ;;  %v1006_v17 = vadd.f32 %v4495_v12, %v969_v4  ;;  %v4552_v3 = vpop.permute.xlu1 %873 }
  0xd7   :  { %v290_v18 = vpop.f32.mrf.mxu0  ;;  %v614_v19 = vpop.f32.mrf.mxu1  ;;  %v942_v52 = vmul.f32 %v4478_v63, %v4497_v16  ;;  %5304 = vst [vmem:[#allocation4_spill] sm:$0xff] %v4552_v3 }
  0xd8   :  { %v1005_v21 = vadd.f32 %v4495_v12, %v968_v13  ;;  %v971_v22 = vadd.f32 %v939_v8, %v620_v14  ;;  %v615_v23 = vadd.f32 %v614_v19, %v290_v18  ;;  %3548 = vmatprep.mubr.msk.f32.mxu0 %vm1072_vm2, %v1035_v11  ;;  %v1038_v32 = vmax.f32 %v1006_v17, 0.0  ;;  %v4559_v13 = vpop.permute.xlu0 %868 }
  0xd9   :  { %v3443_v24 = vpop.f32.mrf.mxu0  ;;  %v3493_v25 = vpop.f32.mrf.mxu1  ;;  %3549 = vmatmul.mubr.msk.f32.gmra.mxu0 %vm1072_vm2, %v1036_v15  ;;  %v945_v11 = vmul.f32 %v4478_v63, %v4505_v29  ;;  %5305 = vst [vmem:[#allocation5_spill] sm:$0xff] %v4559_v13 }
  0xda   :  { %v1037_v28 = vmax.f32 %v1005_v21, 0.0  ;;  %v970_v30 = vadd.f32 %v938_v20, %v615_v23  ;;  %v630_v31 = vadd.f32 %v3493_v25, %v3443_v24  ;;  %v1008_v33 = vadd.f32 %v4495_v12, %v971_v22 }
  0xdb   :  { %v300_v34 = vpop.f32.mrf.mxu0  ;;  %v624_v35 = vpop.f32.mrf.mxu1  ;;  %v944_v22 = vmul.f32 %v4478_v63, %v4510_v38 }
  0xdc   :  { %v1007_v39 = vadd.f32 %v4495_v12, %v970_v30  ;;  %v973_v40 = vadd.f32 %v941_v26, %v630_v31  ;;  %v625_v41 = vadd.f32 %v624_v35, %v300_v34  ;;  %3551 = vmatprep.mubr.msk.f32.mxu0 %vm1072_vm2, %v1037_v28  ;;  %v1040_v48 = vmax.f32 %v1008_v33, 0.0  ;;  %v4569_v31 = vpop.permute.xlu1 %883 }
  0xdd   :  { %v3446_v42 = vpop.f32.mrf.mxu0  ;;  %v3496_v43 = vpop.f32.mrf.mxu1  ;;  %3552 = vmatmul.mubr.msk.f32.gmra.mxu0 %vm1072_vm2, %v1038_v32  ;;  %v947_v30 = vmul.f32 %v4478_v63, %v4520_v1  ;;  %5306 = vst [vmem:[#allocation6_spill] sm:$0xff] %v4569_v31 }
  0xde   :  { %v1039_v45 = vmax.f32 %v1007_v39, 0.0  ;;  %v972_v46 = vadd.f32 %v940_v36, %v625_v41  ;;  %v640_v47 = vadd.f32 %v3496_v43, %v3446_v42  ;;  %v1010_v49 = vadd.f32 %v4495_v12, %v973_v40  ;;  %v4574_v42 = vpop.permute.xlu0 %878 }
  0xdf   :  { %v310_v50 = vpop.f32.mrf.mxu0  ;;  %v634_v51 = vpop.f32.mrf.mxu1  ;;  %v946_v41 = vmul.f32 %v4478_v63, %v4527_v9  ;;  %5307 = vst [vmem:[#allocation7_spill] sm:$0xff] %v4574_v42 }
  0xe0   :  { %v1009_v4 = vadd.f32 %v4495_v12, %v972_v46  ;;  %v975_v5 = vadd.f32 %v943_v44, %v640_v47  ;;  %v635_v6 = vadd.f32 %v634_v51, %v310_v50  ;;  %3554 = vmatprep.mubr.msk.f32.mxu0 %vm1072_vm2, %v1039_v45  ;;  %v1042_v18 = vmax.f32 %v1010_v49, 0.0 }
  0xe1   :  { %v3449_v7 = vpop.f32.mrf.mxu0  ;;  %v3499_v8 = vpop.f32.mrf.mxu1  ;;  %3555 = vmatmul.mubr.msk.f32.gmra.mxu0 %vm1072_vm2, %v1040_v48  ;;  %v949_v48 = vmul.f32 %v4478_v63, %v4537_v27 }
  0xe2   :  { %v1041_v14 = vmax.f32 %v1009_v4, 0.0  ;;  %v974_v15 = vadd.f32 %v942_v52, %v635_v6  ;;  %v650_v17 = vadd.f32 %v3499_v8, %v3449_v7  ;;  %v1012_v19 = vadd.f32 %v4495_v12, %v975_v5  ;;  %v4584_v8 = vpop.permute.xlu1 %893 }
  0xe3   :  { %v320_v20 = vpop.f32.mrf.mxu0  ;;  %v644_v21 = vpop.f32.mrf.mxu1  ;;  %v948_v7 = vmul.f32 %v4478_v63, %v4542_v37  ;;  %5308 = vst [vmem:[#allocation8_spill] sm:$0xff] %v4584_v8 }
  0xe4   :  { %v1011_v23 = vadd.f32 %v4495_v12, %v974_v15  ;;  %v977_v24 = vadd.f32 %v945_v11, %v650_v17  ;;  %v645_v25 = vadd.f32 %v644_v21, %v320_v20  ;;  %3557 = vmatprep.mubr.msk.f32.mxu0 %vm1072_vm2, %v1041_v14  ;;  %v1044_v35 = vmax.f32 %v1012_v19, 0.0  ;;  %v4591_v20 = vpop.permute.xlu0 %888 }
  0xe5   :  { %v3452_v26 = vpop.f32.mrf.mxu0  ;;  %v3502_v28 = vpop.f32.mrf.mxu1  ;;  %3558 = vmatmul.mubr.msk.f32.gmra.mxu0 %vm1072_vm2, %v1042_v18  ;;  %v951_v19 = vmul.f32 %v4478_v63, %v4552_v3  ;;  %5309 = vst [vmem:[#allocation9_spill] sm:$0xff] %v4591_v20 }
  0xe6   :  { %v1043_v32 = vmax.f32 %v1011_v23, 0.0  ;;  %v976_v33 = vadd.f32 %v944_v22, %v645_v25  ;;  %v660_v34 = vadd.f32 %v3502_v28, %v3452_v26  ;;  %v1014_v36 = vadd.f32 %v4495_v12, %v977_v24 }
  0xe7   :  { %v330_v39 = vpop.f32.mrf.mxu0  ;;  %v654_v40 = vpop.f32.mrf.mxu1 }
  0xe8   :  { %v1013_v43 = vadd.f32 %v4495_v12, %v976_v33  ;;  %v979_v44 = vadd.f32 %v947_v30, %v660_v34  ;;  %v655_v45 = vadd.f32 %v654_v40, %v330_v39  ;;  %3560 = vmatprep.mubr.msk.f32.mxu0 %vm1072_vm2, %v1043_v32  ;;  %v1046_v52 = vmax.f32 %v1014_v36, 0.0  ;;  %v4601_v40 = vpop.permute.xlu1 %903 }
  0xe9   :  { %v3455_v46 = vpop.f32.mrf.mxu0  ;;  %v3505_v47 = vpop.f32.mrf.mxu1  ;;  %3561 = vmatmul.mubr.msk.f32.gmra.mxu0 %vm1072_vm2, %v1044_v35  ;;  %v950_v30 = vmul.f32 %v4478_v63, %v4559_v13  ;;  %v953_v39 = vmul.f32 %v4478_v63, %v4569_v31  ;;  %5310 = vst [vmem:[#allocation10_spill] sm:$0xff] %v4601_v40 }
  0xea   :  { %v1045_v49 = vmax.f32 %v1013_v43, 0.0  ;;  %v978_v50 = vadd.f32 %v946_v41, %v655_v45  ;;  %v670_v51 = vadd.f32 %v3505_v47, %v3455_v46  ;;  %v1016_v4 = vadd.f32 %v4495_v12, %v979_v44 }
  0xeb   :  { %v340_v5 = vpop.f32.mrf.mxu0  ;;  %v664_v6 = vpop.f32.mrf.mxu1 }
  0xec   :  { %v1015_v11 = vadd.f32 %v4495_v12, %v978_v50  ;;  %v981_v14 = vadd.f32 %v949_v48, %v670_v51  ;;  %v665_v15 = vadd.f32 %v664_v6, %v340_v5  ;;  %3563 = vmatprep.mubr.msk.f32.mxu0 %vm1072_vm2, %v1045_v49  ;;  %v1048_v24 = vmax.f32 %v1016_v4, 0.0  ;;  %v4606_v50 = vpop.permute.xlu0 %898 }
  0xed   :  { %v3458_v17 = vpop.f32.mrf.mxu0  ;;  %v3508_v18 = vpop.f32.mrf.mxu1  ;;  %3564 = vmatmul.mubr.msk.f32.gmra.mxu0 %vm1072_vm2, %v1046_v52  ;;  %v952_v49 = vmul.f32 %v4478_v63, %v4574_v42  ;;  %5311 = vst [vmem:[#allocation11_spill] sm:$0xff] %v4606_v50 }
  0xee   :  { %v1047_v21 = vmax.f32 %v1015_v11, 0.0  ;;  %v980_v22 = vadd.f32 %v948_v7, %v665_v15  ;;  %v680_v23 = vadd.f32 %v3508_v18, %v3458_v17  ;;  %v1018_v25 = vadd.f32 %v4495_v12, %v981_v14 }
  0xef   :  { %v350_v26 = vpop.f32.mrf.mxu0  ;;  %v674_v28 = vpop.f32.mrf.mxu1  ;;  %v955_v7 = vmul.f32 %v4478_v63, %v4584_v8 }
  0xf0   :  { %v1017_v32 = vadd.f32 %v4495_v12, %v980_v22  ;;  %v983_v33 = vadd.f32 %v951_v19, %v680_v23  ;;  %v675_v34 = vadd.f32 %v674_v28, %v350_v26  ;;  %3566 = vmatprep.mubr.msk.f32.mxu0 %vm1072_vm2, %v1047_v21  ;;  %v1050_v45 = vmax.f32 %v1018_v25, 0.0  ;;  %v4616_v23 = vpop.permute.xlu1 %913 }
  0xf1   :  { %v3461_v35 = vpop.f32.mrf.mxu0  ;;  %v3511_v36 = vpop.f32.mrf.mxu1  ;;  %3567 = vmatmul.mubr.msk.f32.gmra.mxu0 %vm1072_vm2, %v1048_v24  ;;  %v954_v22 = vmul.f32 %v4478_v63, %v4591_v20  ;;  %5312 = vst [vmem:[#allocation12_spill] sm:$0xff] %v4616_v23 }
  0xf2   :  { %v1049_v41 = vmax.f32 %v1017_v32, 0.0  ;;  %v982_v43 = vadd.f32 %v950_v30, %v675_v34  ;;  %v690_v44 = vadd.f32 %v3511_v36, %v3461_v35  ;;  %v1020_v46 = vadd.f32 %v4495_v12, %v983_v33  ;;  %v4623_v33 = vpop.permute.xlu0 %908 }
  0xf3   :  { %v360_v47 = vpop.f32.mrf.mxu0  ;;  %v684_v48 = vpop.f32.mrf.mxu1  ;;  %v957_v32 = vmul.f32 %v4478_v63, %v4601_v40  ;;  %5313 = vst [vmem:[#allocation13_spill] sm:$0xff] %v4623_v33 }
  0xf4   :  { %v1019_v51 = vadd.f32 %v4495_v12, %v982_v43  ;;  %v985_v52 = vadd.f32 %v953_v39, %v690_v44  ;;  %v685_v4 = vadd.f32 %v684_v48, %v360_v47  ;;  %3569 = vmatprep.mubr.msk.f32.mxu0 %vm1072_vm2, %v1049_v41  ;;  %v1052_v17 = vmax.f32 %v1020_v46, 0.0 }
  0xf5   :  { %v3464_v5 = vpop.f32.mrf.mxu0  ;;  %v3514_v6 = vpop.f32.mrf.mxu1  ;;  %3570 = vmatmul.mubr.msk.f32.gmra.mxu0 %vm1072_vm2, %v1050_v45  ;;  %v956_v45 = vmul.f32 %v4478_v63, %v4606_v50 }
  0xf6   :  { %v1051_v11 = vmax.f32 %v1019_v51, 0.0  ;;  %v984_v14 = vadd.f32 %v952_v49, %v685_v4  ;;  %v700_v15 = vadd.f32 %v3514_v6, %v3464_v5  ;;  %v1022_v18 = vadd.f32 %v4495_v12, %v985_v52  ;;  %v4633_v4 = vpop.permute.xlu1 %923 }
  0xf7   :  { %v370_v19 = vpop.f32.mrf.mxu0  ;;  %v694_v21 = vpop.f32.mrf.mxu1  ;;  %v959_v52 = vmul.f32 %v4478_v63, %v4616_v23  ;;  %5314 = vst [vmem:[#allocation14_spill] sm:$0xff] %v4633_v4 }
  0xf8   :  { %v1021_v24 = vadd.f32 %v4495_v12, %v984_v14  ;;  %v987_v25 = vadd.f32 %v955_v7, %v700_v15  ;;  %v695_v26 = vadd.f32 %v694_v21, %v370_v19  ;;  %3572 = vmatprep.mubr.msk.f32.mxu0 %vm1072_vm2, %v1051_v11  ;;  %v1054_v39 = vmax.f32 %v1022_v18, 0.0  ;;  %v4638_v19 = vpop.permute.xlu0 %918 }
  0xf9   :  { %v3467_v28 = vpop.f32.mrf.mxu0  ;;  %v3517_v30 = vpop.f32.mrf.mxu1  ;;  %3573 = vmatmul.mubr.msk.f32.gmra.mxu0 %vm1072_vm2, %v1052_v17  ;;  %v958_v18 = vmul.f32 %v4478_v63, %v4623_v33  ;;  %5315 = vst [vmem:[#allocation15_spill] sm:$0xff] %v4638_v19 }
  0xfa   :  { %v1053_v34 = vmax.f32 %v1021_v24, 0.0  ;;  %v986_v35 = vadd.f32 %v954_v22, %v695_v26  ;;  %v710_v36 = vadd.f32 %v3517_v30, %v3467_v28  ;;  %v1024_v41 = vadd.f32 %v4495_v12, %v987_v25 }
  0xfb   :  { %v380_v43 = vpop.f32.mrf.mxu0  ;;  %v704_v44 = vpop.f32.mrf.mxu1  ;;  %v961_v28 = vmul.f32 %v4478_v63, %v4633_v4 }
  0xfc   :  { %v1023_v46 = vadd.f32 %v4495_v12, %v986_v35  ;;  %v989_v47 = vadd.f32 %v957_v32, %v710_v36  ;;  %v705_v48 = vadd.f32 %v704_v44, %v380_v43  ;;  %3575 = vmatprep.mubr.msk.f32.mxu0 %vm1072_vm2, %v1053_v34  ;;  %v1056_v11 = vmax.f32 %v1024_v41, 0.0 }
  0xfd   :  { %v3470_v49 = vpop.f32.mrf.mxu0  ;;  %v3520_v51 = vpop.f32.mrf.mxu1  ;;  %3576 = vmatmul.mubr.msk.f32.gmra.mxu0 %vm1072_vm2, %v1054_v39  ;;  %v960_v43 = vmul.f32 %v4478_v63, %v4638_v19 }
  0xfe   :  { %v1055_v5 = vmax.f32 %v1023_v46, 0.0  ;;  %v988_v6 = vadd.f32 %v956_v45, %v705_v48  ;;  %v720_v7 = vadd.f32 %v3520_v51, %v3470_v49  ;;  %v1026_v14 = vadd.f32 %v4495_v12, %v989_v47 }
  0xff   :  { %v390_v15 = vpop.f32.mrf.mxu0  ;;  %v714_v17 = vpop.f32.mrf.mxu1 }
 0x100   :  { %v1025_v21 = vadd.f32 %v4495_v12, %v988_v6  ;;  %v991_v22 = vadd.f32 %v959_v52, %v720_v7  ;;  %v715_v24 = vadd.f32 %v714_v17, %v390_v15  ;;  %3578 = vmatprep.mubr.msk.f32.mxu0 %vm1072_vm2, %v1055_v5  ;;  %v1058_v35 = vmax.f32 %v1026_v14, 0.0  ;;  %v1829_v6 = vld [vmem:[%s5283_s3 + $0x100] sm:$0xff]  ;;  %v1828_v7 = vld [vmem:[%s5283_s3 + $0xf8] sm:$0xff]  ;;  %v1823_v17 = vld [vmem:[%s5283_s3 + $0xd0] sm:$0xff] }
 0x101   :  { %v3473_v25 = vpop.f32.mrf.mxu0  ;;  %v3523_v26 = vpop.f32.mrf.mxu1  ;;  %3579 = vmatmul.mubr.msk.f32.gmra.mxu0 %vm1072_vm2, %v1056_v11  ;;  %3656 = vmatprep.subr.mxu0 %v1829_v6  ;;  %v1826_v11 = vld [vmem:[%s5283_s3 + $0xe8] sm:$0xff]  ;;  %v1825_v14 = vld [vmem:[%s5283_s3 + $0xe0] sm:$0xff]  ;;  %v1824_v15 = vld [vmem:[%s5283_s3 + $0xd8] sm:$0xff] }
 0x102   :  { %v1057_v30 = vmax.f32 %v1025_v21, 0.0  ;;  %v990_v32 = vadd.f32 %v958_v18, %v715_v24  ;;  %v730_v34 = vadd.f32 %v3523_v26, %v3473_v25  ;;  %v1028_v36 = vadd.f32 %v4495_v12, %v991_v22  ;;  %3657 = vmatpush3.msra.mxu0 %v1829_v6  ;;  %v1822_v18 = vld [vmem:[%s5283_s3 + $0xc8] sm:$0xff]  ;;  %v1821_v21 = vld [vmem:[%s5283_s3 + $0xc0] sm:$0xff]  ;;  %v1820_v22 = vld [vmem:[%s5283_s3 + $0xb8] sm:$0xff] }
 0x103   :  { %v400_v39 = vpop.f32.mrf.mxu0  ;;  %v724_v41 = vpop.f32.mrf.mxu1  ;;  %3658 = vmatprep.subr.mxu0 %v1828_v7 }
 0x104   :  { %v1027_v44 = vadd.f32 %v4495_v12, %v990_v32  ;;  %v993_v45 = vadd.f32 %v961_v28, %v730_v34  ;;  %v725_v46 = vadd.f32 %v724_v41, %v400_v39  ;;  %3581 = vmatprep.mubr.msk.f32.mxu0 %vm1072_vm2, %v1057_v30  ;;  %v1060_v49 = vmax.f32 %v1028_v36, 0.0  ;;  %3659 = vmatpush3.msra.mxu0 %v1828_v7 }
 0x105   :  { %3582 = vmatmul.mubr.msk.f32.gmra.mxu0 %vm1072_vm2, %v1058_v35 }
 0x106   :  { %v1059_v47 = vmax.f32 %v1027_v44, 0.0  ;;  %v992_v48 = vadd.f32 %v960_v43, %v725_v46  ;;  %v1030_v51 = vadd.f32 %v4495_v12, %v993_v45 }
 0x108   :  { %v1029_v52 = vadd.f32 %v4495_v12, %v992_v48  ;;  %3584 = vmatprep.mubr.msk.f32.mxu0 %vm1072_vm2, %v1059_v47  ;;  %v1062_v5 = vmax.f32 %v1030_v51, 0.0  ;;  %v1827_v12 = vld [vmem:[%s5283_s3 + $0xf0] sm:$0xff] }
 0x109   :  { %3585 = vmatmul.mubr.msk.f32.gmra.mxu0 %vm1072_vm2, %v1060_v49  ;;  %3660 = vmatprep.subr.mxu0 %v1827_v12 }
 0x10a   :  { %v1061_v63 = vmax.f32 %v1029_v52, 0.0  ;;  %3661 = vmatpush3.msra.mxu0 %v1827_v12 }
 0x10b   :  { %3662 = vmatprep.subr.mxu0 %v1826_v11 }
 0x10c   :  { %3587 = vmatprep.mubr.msk.f32.mxu0 %vm1072_vm2, %v1061_v63  ;;  %3663 = vmatpush3.msra.mxu0 %v1826_v11 }
 0x10d   :  { %3588 = vmatmul.mubr.msk.f32.gmra.mxu0 %vm1072_vm2, %v1062_v5  ;;  %3664 = vmatprep.subr.mxu0 %v1825_v14 }
 0x10e   :  { %3665 = vmatpush3.msra.mxu0 %v1825_v14 }
 0x10f   :  { %3666 = vmatprep.subr.mxu0 %v1824_v15 }
 0x110   :  { %3667 = vmatpush3.msra.mxu0 %v1824_v15 }
 0x111   :  { %3668 = vmatprep.subr.mxu0 %v1823_v17 }
 0x112   :  { %3669 = vmatpush3.msra.mxu0 %v1823_v17 }
 0x113   :  { %3670 = vmatprep.subr.mxu0 %v1822_v18 }
 0x114   :  { %3671 = vmatpush3.msra.mxu0 %v1822_v18 }
 0x115   :  { %3672 = vmatprep.subr.mxu0 %v1821_v21 }
 0x116   :  { %3673 = vmatpush3.msra.mxu0 %v1821_v21 }
 0x117   :  { %3674 = vmatprep.subr.mxu0 %v1820_v22 }
 0x118   :  { %3675 = vmatpush3.msra.mxu0 %v1820_v22 }
 0x191   :  { %v3544_v24 = vpop.f32.mrf.mxu0 }
 0x192   :  { %v1395_v28 = vmax.f32 %v3544_v24, 0.0 }
 0x193   :  { %v1235_v25 = vpop.f32.mrf.mxu0 }
 0x194   :  { %v1394_v26 = vmax.f32 %v1235_v25, 0.0 }
 0x195   :  { %v3547_v30 = vpop.f32.mrf.mxu0 }
 0x196   :  { %3608 = vmatprep.mubr.msk.f32.mxu1 %vm1072_vm2, %v1394_v26  ;;  %v1397_v35 = vmax.f32 %v3547_v30, 0.0 }
 0x197   :  { %v1245_v32 = vpop.f32.mrf.mxu0  ;;  %3609 = vmatmul.mubr.msk.f32.vlgmr.msra.gmra.mxu1 %vm1072_vm2, %v1395_v28 }
 0x198   :  { %v1396_v34 = vmax.f32 %v1245_v32, 0.0 }
 0x199   :  { %v3550_v36 = vpop.f32.mrf.mxu0 }
 0x19a   :  { %3611 = vmatprep.mubr.msk.f32.mxu1 %vm1072_vm2, %v1396_v34  ;;  %v1399_v43 = vmax.f32 %v3550_v36, 0.0 }
 0x19b   :  { %v1255_v39 = vpop.f32.mrf.mxu0  ;;  %3612 = vmatmul.mubr.msk.f32.gmra.mxu1 %vm1072_vm2, %v1397_v35 }
 0x19c   :  { %v1398_v41 = vmax.f32 %v1255_v39, 0.0 }
 0x19d   :  { %v3553_v44 = vpop.f32.mrf.mxu0 }
 0x19e   :  { %3614 = vmatprep.mubr.msk.f32.mxu1 %vm1072_vm2, %v1398_v41  ;;  %v1401_v47 = vmax.f32 %v3553_v44, 0.0 }
 0x19f   :  { %v1265_v45 = vpop.f32.mrf.mxu0  ;;  %3615 = vmatmul.mubr.msk.f32.gmra.mxu1 %vm1072_vm2, %v1399_v43 }
 0x1a0   :  { %v1400_v46 = vmax.f32 %v1265_v45, 0.0 }
 0x1a1   :  { %v3556_v48 = vpop.f32.mrf.mxu0 }
 0x1a2   :  { %3617 = vmatprep.mubr.msk.f32.mxu1 %vm1072_vm2, %v1400_v46  ;;  %v1403_v52 = vmax.f32 %v3556_v48, 0.0 }
 0x1a3   :  { %v1275_v49 = vpop.f32.mrf.mxu0  ;;  %3618 = vmatmul.mubr.msk.f32.gmra.mxu1 %vm1072_vm2, %v1401_v47 }
 0x1a4   :  { %v1402_v51 = vmax.f32 %v1275_v49, 0.0 }
 0x1a5   :  { %v3559_v63 = vpop.f32.mrf.mxu0 }
 0x1a6   :  { %3620 = vmatprep.mubr.msk.f32.mxu1 %vm1072_vm2, %v1402_v51  ;;  %v1405_v7 = vmax.f32 %v3559_v63, 0.0 }
 0x1a7   :  { %v1285_v5 = vpop.f32.mrf.mxu0  ;;  %3621 = vmatmul.mubr.msk.f32.gmra.mxu1 %vm1072_vm2, %v1403_v52 }
 0x1a8   :  { %v1404_v6 = vmax.f32 %v1285_v5, 0.0 }
 0x1a9   :  { %v3562_v12 = vpop.f32.mrf.mxu0 }
 0x1aa   :  { %3623 = vmatprep.mubr.msk.f32.mxu1 %vm1072_vm2, %v1404_v6  ;;  %v1407_v15 = vmax.f32 %v3562_v12, 0.0 }
 0x1ab   :  { %v1295_v11 = vpop.f32.mrf.mxu0  ;;  %3624 = vmatmul.mubr.msk.f32.gmra.mxu1 %vm1072_vm2, %v1405_v7 }
 0x1ac   :  { %v1406_v14 = vmax.f32 %v1295_v11, 0.0 }
 0x1ad   :  { %v3565_v17 = vpop.f32.mrf.mxu0 }
 0x1ae   :  { %3626 = vmatprep.mubr.msk.f32.mxu1 %vm1072_vm2, %v1406_v14  ;;  %v1409_v22 = vmax.f32 %v3565_v17, 0.0 }
 0x1af   :  { %v1305_v18 = vpop.f32.mrf.mxu0  ;;  %3627 = vmatmul.mubr.msk.f32.gmra.mxu1 %vm1072_vm2, %v1407_v15 }
 0x1b0   :  { %v1408_v21 = vmax.f32 %v1305_v18, 0.0 }
 0x1b1   :  { %v3568_v24 = vpop.f32.mrf.mxu0 }
 0x1b2   :  { %3629 = vmatprep.mubr.msk.f32.mxu1 %vm1072_vm2, %v1408_v21  ;;  %v1411_v28 = vmax.f32 %v3568_v24, 0.0  ;;  %v2188_v24 = vld [vmem:[%s5283_s3 + $0x128] sm:$0xff] }
 0x1b3   :  { %v1315_v25 = vpop.f32.mrf.mxu0  ;;  %3630 = vmatmul.mubr.msk.f32.gmra.mxu1 %vm1072_vm2, %v1409_v22  ;;  %3724 = vmatprep.subr.mxu1 %v2188_v24 }
 0x1b4   :  { %v1410_v26 = vmax.f32 %v1315_v25, 0.0  ;;  %v2187_v25 = vld [vmem:[%s5283_s3 + $0x120] sm:$0xff]  ;;  %3725 = vmatpush3.msra.mxu1 %v2188_v24 }
 0x1b5   :  { %v3571_v30 = vpop.f32.mrf.mxu0  ;;  %3726 = vmatprep.subr.mxu1 %v2187_v25 }
 0x1b6   :  { %3632 = vmatprep.mubr.msk.f32.mxu1 %vm1072_vm2, %v1410_v26  ;;  %v1413_v35 = vmax.f32 %v3571_v30, 0.0  ;;  %v2186_v26 = vld [vmem:[%s5283_s3 + $0x118] sm:$0xff]  ;;  %3727 = vmatpush3.msra.mxu1 %v2187_v25  ;;  %v2184_v30 = vld [vmem:[%s5283_s3 + $0x108] sm:$0xff] }
 0x1b7   :  { %v1325_v32 = vpop.f32.mrf.mxu0  ;;  %3633 = vmatmul.mubr.msk.f32.gmra.mxu1 %vm1072_vm2, %v1411_v28  ;;  %v2185_v28 = vld [vmem:[%s5283_s3 + $0x110] sm:$0xff]  ;;  %3728 = vmatprep.subr.mxu1 %v2186_v26 }
 0x1b8   :  { %v1412_v34 = vmax.f32 %v1325_v32, 0.0  ;;  %3729 = vmatpush3.msra.mxu1 %v2186_v26 }
 0x1b9   :  { %v3574_v36 = vpop.f32.mrf.mxu0  ;;  %3730 = vmatprep.subr.mxu1 %v2185_v28 }
 0x1ba   :  { %3635 = vmatprep.mubr.msk.f32.mxu1 %vm1072_vm2, %v1412_v34  ;;  %v1415_v43 = vmax.f32 %v3574_v36, 0.0  ;;  %3731 = vmatpush3.msra.mxu1 %v2185_v28 }
 0x1bb   :  { %v1335_v39 = vpop.f32.mrf.mxu0  ;;  %3636 = vmatmul.mubr.msk.f32.gmra.mxu1 %vm1072_vm2, %v1413_v35  ;;  %3732 = vmatprep.subr.mxu1 %v2184_v30 }
 0x1bc   :  { %v1414_v41 = vmax.f32 %v1335_v39, 0.0  ;;  %3733 = vmatpush3.msra.mxu1 %v2184_v30 }
 0x1bd   :  { %v3577_v44 = vpop.f32.mrf.mxu0 }
 0x1be   :  { %3638 = vmatprep.mubr.msk.f32.mxu1 %vm1072_vm2, %v1414_v41  ;;  %v1417_v47 = vmax.f32 %v3577_v44, 0.0 }
 0x1bf   :  { %v1345_v45 = vpop.f32.mrf.mxu0  ;;  %3639 = vmatmul.mubr.msk.f32.gmra.mxu1 %vm1072_vm2, %v1415_v43 }
 0x1c0   :  { %v1416_v46 = vmax.f32 %v1345_v45, 0.0 }
 0x1c1   :  { %v3580_v48 = vpop.f32.mrf.mxu0 }
 0x1c2   :  { %3641 = vmatprep.mubr.msk.f32.mxu1 %vm1072_vm2, %v1416_v46  ;;  %v1419_v52 = vmax.f32 %v3580_v48, 0.0 }
 0x1c3   :  { %v1355_v49 = vpop.f32.mrf.mxu0  ;;  %3642 = vmatmul.mubr.msk.f32.gmra.mxu1 %vm1072_vm2, %v1417_v47 }
 0x1c4   :  { %v1418_v51 = vmax.f32 %v1355_v49, 0.0 }
 0x1c5   :  { %v3583_v63 = vpop.f32.mrf.mxu0 }
 0x1c6   :  { %3644 = vmatprep.mubr.msk.f32.mxu1 %vm1072_vm2, %v1418_v51  ;;  %v1421_v7 = vmax.f32 %v3583_v63, 0.0 }
 0x1c7   :  { %v1365_v5 = vpop.f32.mrf.mxu0  ;;  %3645 = vmatmul.mubr.msk.f32.gmra.mxu1 %vm1072_vm2, %v1419_v52 }
 0x1c8   :  { %v1420_v6 = vmax.f32 %v1365_v5, 0.0 }
 0x1c9   :  { %v3586_v12 = vpop.f32.mrf.mxu0 }
 0x1ca   :  { %3647 = vmatprep.mubr.msk.f32.mxu1 %vm1072_vm2, %v1420_v6  ;;  %v1423_v15 = vmax.f32 %v3586_v12, 0.0 }
 0x1cb   :  { %v1375_v11 = vpop.f32.mrf.mxu0  ;;  %3648 = vmatmul.mubr.msk.f32.gmra.mxu1 %vm1072_vm2, %v1421_v7 }
 0x1cc   :  { %v1422_v14 = vmax.f32 %v1375_v11, 0.0 }
 0x1cd   :  { %v3589_v17 = vpop.f32.mrf.mxu0 }
 0x1ce   :  { %3650 = vmatprep.mubr.msk.f32.mxu1 %vm1072_vm2, %v1422_v14  ;;  %v1425_v22 = vmax.f32 %v3589_v17, 0.0 }
 0x1cf   :  { %v1385_v18 = vpop.f32.mrf.mxu0  ;;  %3651 = vmatmul.mubr.msk.f32.gmra.mxu1 %vm1072_vm2, %v1423_v15 }
 0x1d0   :  { %v1424_v21 = vmax.f32 %v1385_v18, 0.0 }
 0x1d2   :  { %3653 = vmatprep.mubr.msk.f32.mxu1 %vm1072_vm2, %v1424_v21 }
 0x1d3   :  { %3654 = vmatmul.mubr.msk.f32.gmra.mxu1 %vm1072_vm2, %v1425_v22 }
 0x257   :  { %v4734_v32 = vpop.f32.mrf.mxu1 }
 0x258   :  { %v1789_v36 = vmax.f32 %v4734_v32, 0.0 }
 0x259   :  { %v4736_v34 = vpop.f32.mrf.mxu1 }
 0x25a   :  { %v1788_v35 = vmax.f32 %v4736_v34, 0.0 }
 0x25b   :  { %v4740_v39 = vpop.f32.mrf.mxu1 }
 0x25c   :  { %3676 = vmatprep.mubr.msk.f32.mxu0 %vm1830_vm3, %v1788_v35  ;;  %v1791_v44 = vmax.f32 %v4740_v39, 0.0 }
 0x25d   :  { %v4743_v41 = vpop.f32.mrf.mxu1  ;;  %3677 = vmatmul.mubr.msk.f32.vlgmr.msra.gmra.mxu0 %vm1830_vm3, %v1789_v36 }
 0x25e   :  { %v1790_v43 = vmax.f32 %v4743_v41, 0.0 }
 0x25f   :  { %v4748_v45 = vpop.f32.mrf.mxu1 }
 0x260   :  { %3679 = vmatprep.mubr.msk.f32.mxu0 %vm1830_vm3, %v1790_v43  ;;  %v1793_v48 = vmax.f32 %v4748_v45, 0.0 }
 0x261   :  { %v4751_v46 = vpop.f32.mrf.mxu1  ;;  %3680 = vmatmul.mubr.msk.f32.gmra.mxu0 %vm1830_vm3, %v1791_v44 }
 0x262   :  { %v1792_v47 = vmax.f32 %v4751_v46, 0.0 }
 0x263   :  { %v4756_v49 = vpop.f32.mrf.mxu1 }
 0x264   :  { %3682 = vmatprep.mubr.msk.f32.mxu0 %vm1830_vm3, %v1792_v47  ;;  %v1795_v63 = vmax.f32 %v4756_v49, 0.0 }
 0x265   :  { %v4759_v51 = vpop.f32.mrf.mxu1  ;;  %3683 = vmatmul.mubr.msk.f32.gmra.mxu0 %vm1830_vm3, %v1793_v48 }
 0x266   :  { %v1794_v52 = vmax.f32 %v4759_v51, 0.0 }
 0x267   :  { %v4764_v5 = vpop.f32.mrf.mxu1 }
 0x268   :  { %3685 = vmatprep.mubr.msk.f32.mxu0 %vm1830_vm3, %v1794_v52  ;;  %v1797_v12 = vmax.f32 %v4764_v5, 0.0 }
 0x269   :  { %v4767_v6 = vpop.f32.mrf.mxu1  ;;  %3686 = vmatmul.mubr.msk.f32.gmra.mxu0 %vm1830_vm3, %v1795_v63 }
 0x26a   :  { %v1796_v7 = vmax.f32 %v4767_v6, 0.0 }
 0x26b   :  { %v4772_v11 = vpop.f32.mrf.mxu1 }
 0x26c   :  { %3688 = vmatprep.mubr.msk.f32.mxu0 %vm1830_vm3, %v1796_v7  ;;  %v1799_v17 = vmax.f32 %v4772_v11, 0.0 }
 0x26d   :  { %v4775_v14 = vpop.f32.mrf.mxu1  ;;  %3689 = vmatmul.mubr.msk.f32.gmra.mxu0 %vm1830_vm3, %v1797_v12 }
 0x26e   :  { %v1798_v15 = vmax.f32 %v4775_v14, 0.0 }
 0x26f   :  { %v4780_v18 = vpop.f32.mrf.mxu1 }
 0x270   :  { %3691 = vmatprep.mubr.msk.f32.mxu0 %vm1830_vm3, %v1798_v15  ;;  %v1801_v24 = vmax.f32 %v4780_v18, 0.0 }
 0x271   :  { %v4783_v21 = vpop.f32.mrf.mxu1  ;;  %3692 = vmatmul.mubr.msk.f32.gmra.mxu0 %vm1830_vm3, %v1799_v17 }
 0x272   :  { %v1800_v22 = vmax.f32 %v4783_v21, 0.0 }
 0x273   :  { %v4788_v25 = vpop.f32.mrf.mxu1 }
 0x274   :  { %3694 = vmatprep.mubr.msk.f32.mxu0 %vm1830_vm3, %v1800_v22  ;;  %v1803_v30 = vmax.f32 %v4788_v25, 0.0 }
 0x275   :  { %v4791_v26 = vpop.f32.mrf.mxu1  ;;  %3695 = vmatmul.mubr.msk.f32.gmra.mxu0 %vm1830_vm3, %v1801_v24 }
 0x276   :  { %v1802_v28 = vmax.f32 %v4791_v26, 0.0 }
 0x277   :  { %v4796_v35 = vpop.f32.mrf.mxu1 }
 0x278   :  { %3697 = vmatprep.mubr.msk.f32.mxu0 %vm1830_vm3, %v1802_v28  ;;  %v1805_v44 = vmax.f32 %v4796_v35, 0.0 }
 0x279   :  { %v4799_v36 = vpop.f32.mrf.mxu1  ;;  %3698 = vmatmul.mubr.msk.f32.gmra.mxu0 %vm1830_vm3, %v1803_v30 }
 0x27a   :  { %v1804_v43 = vmax.f32 %v4799_v36, 0.0 }
 0x27b   :  { %v4804_v47 = vpop.f32.mrf.mxu1 }
 0x27c   :  { %3700 = vmatprep.mubr.msk.f32.mxu0 %vm1830_vm3, %v1804_v43  ;;  %v1807_v63 = vmax.f32 %v4804_v47, 0.0 }
 0x27d   :  { %v4807_v48 = vpop.f32.mrf.mxu1  ;;  %3701 = vmatmul.mubr.msk.f32.gmra.mxu0 %vm1830_vm3, %v1805_v44 }
 0x27e   :  { %v1806_v52 = vmax.f32 %v4807_v48, 0.0 }
 0x27f   :  { %v4812_v7 = vpop.f32.mrf.mxu1 }
 0x280   :  { %3703 = vmatprep.mubr.msk.f32.mxu0 %vm1830_vm3, %v1806_v52  ;;  %v1809_v17 = vmax.f32 %v4812_v7, 0.0 }
 0x281   :  { %v4815_v12 = vpop.f32.mrf.mxu1  ;;  %3704 = vmatmul.mubr.msk.f32.gmra.mxu0 %vm1830_vm3, %v1807_v63 }
 0x282   :  { %v1808_v15 = vmax.f32 %v4815_v12, 0.0 }
 0x283   :  { %v4820_v22 = vpop.f32.mrf.mxu1 }
 0x284   :  { %3706 = vmatprep.mubr.msk.f32.mxu0 %vm1830_vm3, %v1808_v15  ;;  %v1811_v30 = vmax.f32 %v4820_v22, 0.0 }
 0x285   :  { %v4823_v24 = vpop.f32.mrf.mxu1  ;;  %3707 = vmatmul.mubr.msk.f32.gmra.mxu0 %vm1830_vm3, %v1809_v17 }
 0x286   :  { %v1810_v28 = vmax.f32 %v4823_v24, 0.0 }
 0x287   :  { %v4828_v43 = vpop.f32.mrf.mxu1 }
 0x288   :  { %3709 = vmatprep.mubr.msk.f32.mxu0 %vm1830_vm3, %v1810_v28  ;;  %v1813_v63 = vmax.f32 %v4828_v43, 0.0 }
 0x289   :  { %v4831_v44 = vpop.f32.mrf.mxu1  ;;  %3710 = vmatmul.mubr.msk.f32.gmra.mxu0 %vm1830_vm3, %v1811_v30 }
 0x28a   :  { %v1812_v52 = vmax.f32 %v4831_v44, 0.0 }
 0x28b   :  { %v4836_v15 = vpop.f32.mrf.mxu1 }
 0x28c   :  { %3712 = vmatprep.mubr.msk.f32.mxu0 %vm1830_vm3, %v1812_v52  ;;  %v1815_v28 = vmax.f32 %v4836_v15, 0.0 }
 0x28d   :  { %v4839_v17 = vpop.f32.mrf.mxu1  ;;  %3713 = vmatmul.mubr.msk.f32.gmra.mxu0 %vm1830_vm3, %v1813_v63 }
 0x28e   :  { %v1814_v19 = vmax.f32 %v4839_v17, 0.0 }
 0x28f   :  { %v4844_v4 = vpop.f32.mrf.mxu1 }
 0x290   :  { %3715 = vmatprep.mubr.msk.f32.mxu0 %vm1830_vm3, %v1814_v19  ;;  %v1817_v52 = vmax.f32 %v4844_v4, 0.0 }
 0x291   :  { %v4847_v30 = vpop.f32.mrf.mxu1  ;;  %3716 = vmatmul.mubr.msk.f32.gmra.mxu0 %vm1830_vm3, %v1815_v28 }
 0x292   :  { %v1816_v33 = vmax.f32 %v4847_v30, 0.0 }
 0x293   :  { %v4852_v23 = vpop.f32.mrf.mxu1 }
 0x294   :  { %3718 = vmatprep.mubr.msk.f32.mxu0 %vm1830_vm3, %v1816_v33  ;;  %v1819_v19 = vmax.f32 %v4852_v23, 0.0 }
 0x295   :  { %v4855_v63 = vpop.f32.mrf.mxu1  ;;  %3719 = vmatmul.mubr.msk.f32.gmra.mxu0 %vm1830_vm3, %v1817_v52 }
 0x296   :  { %v1818_v50 = vmax.f32 %v4855_v63, 0.0 }
 0x298   :  { %3721 = vmatprep.mubr.msk.f32.mxu0 %vm1830_vm3, %v1818_v50 }
 0x299   :  { %3722 = vmatmul.mubr.msk.f32.gmra.mxu0 %vm1830_vm3, %v1819_v19 }
 0x31d   :  { %v3678_v28 = vpop.f32.mrf.mxu0 }
 0x31e   :  { %v2153_v8 = vmax.f32 %v3678_v28, 0.0 }
 0x31f   :  { %v1993_v40 = vpop.f32.mrf.mxu0 }
 0x320   :  { %v2152_v20 = vmax.f32 %v1993_v40, 0.0 }
 0x321   :  { %v3681_v42 = vpop.f32.mrf.mxu0 }
 0x322   :  { %3734 = vmatprep.mubr.msk.f32.mxu1 %vm2189_vm4, %v2152_v20  ;;  %v2155_v31 = vmax.f32 %v3681_v42, 0.0 }
 0x323   :  { %v2003_v33 = vpop.f32.mrf.mxu0  ;;  %3735 = vmatmul.mubr.msk.f32.vlgmr.msra.gmra.mxu1 %vm2189_vm4, %v2153_v8 }
 0x324   :  { %v2154_v52 = vmax.f32 %v2003_v33, 0.0 }
 0x325   :  { %v3684_v13 = vpop.f32.mrf.mxu0 }
 0x326   :  { %3737 = vmatprep.mubr.msk.f32.mxu1 %vm2189_vm4, %v2154_v52  ;;  %v2157_v19 = vmax.f32 %v3684_v13, 0.0 }
 0x327   :  { %v2013_v3 = vpop.f32.mrf.mxu0  ;;  %3738 = vmatmul.mubr.msk.f32.gmra.mxu1 %vm2189_vm4, %v2155_v31 }
 0x328   :  { %v2156_v50 = vmax.f32 %v2013_v3, 0.0 }
 0x329   :  { %v3687_v37 = vpop.f32.mrf.mxu0 }
 0x32a   :  { %3740 = vmatprep.mubr.msk.f32.mxu1 %vm2189_vm4, %v2156_v50  ;;  %v2159_v28 = vmax.f32 %v3687_v37, 0.0 }
 0x32b   :  { %v2023_v40 = vpop.f32.mrf.mxu0  ;;  %3741 = vmatmul.mubr.msk.f32.gmra.mxu1 %vm2189_vm4, %v2157_v19 }
 0x32c   :  { %v2158_v20 = vmax.f32 %v2023_v40, 0.0 }
 0x32d   :  { %v3690_v27 = vpop.f32.mrf.mxu0 }
 0x32e   :  { %3743 = vmatprep.mubr.msk.f32.mxu1 %vm2189_vm4, %v2158_v20  ;;  %v2161_v33 = vmax.f32 %v3690_v27, 0.0 }
 0x32f   :  { %v2033_v42 = vpop.f32.mrf.mxu0  ;;  %3744 = vmatmul.mubr.msk.f32.gmra.mxu1 %vm2189_vm4, %v2159_v28 }
 0x330   :  { %v2160_v8 = vmax.f32 %v2033_v42, 0.0 }
 0x331   :  { %v3693_v52 = vpop.f32.mrf.mxu0 }
 0x332   :  { %3746 = vmatprep.mubr.msk.f32.mxu1 %vm2189_vm4, %v2160_v8  ;;  %v2163_v31 = vmax.f32 %v3693_v52, 0.0 }
 0x333   :  { %v2043_v3 = vpop.f32.mrf.mxu0  ;;  %3747 = vmatmul.mubr.msk.f32.gmra.mxu1 %vm2189_vm4, %v2161_v33 }
 0x334   :  { %v2162_v13 = vmax.f32 %v2043_v3, 0.0 }
 0x335   :  { %v3696_v50 = vpop.f32.mrf.mxu0 }
 0x336   :  { %3749 = vmatprep.mubr.msk.f32.mxu1 %vm2189_vm4, %v2162_v13  ;;  %v2165_v40 = vmax.f32 %v3696_v50, 0.0 }
 0x337   :  { %v2053_v37 = vpop.f32.mrf.mxu0  ;;  %3750 = vmatmul.mubr.msk.f32.gmra.mxu1 %vm2189_vm4, %v2163_v31 }
 0x338   :  { %v2164_v19 = vmax.f32 %v2053_v37, 0.0 }
 0x339   :  { %v3699_v20 = vpop.f32.mrf.mxu0 }
 0x33a   :  { %3752 = vmatprep.mubr.msk.f32.mxu1 %vm2189_vm4, %v2164_v19  ;;  %v2167_v42 = vmax.f32 %v3699_v20, 0.0 }
 0x33b   :  { %v2063_v27 = vpop.f32.mrf.mxu0  ;;  %3753 = vmatmul.mubr.msk.f32.gmra.mxu1 %vm2189_vm4, %v2165_v40 }
 0x33c   :  { %v2166_v28 = vmax.f32 %v2063_v27, 0.0 }
 0x33d   :  { %v3702_v8 = vpop.f32.mrf.mxu0 }
 0x33e   :  { %3755 = vmatprep.mubr.msk.f32.mxu1 %vm2189_vm4, %v2166_v28  ;;  %v2169_v3 = vmax.f32 %v3702_v8, 0.0 }
 0x33f   :  { %v2073_v33 = vpop.f32.mrf.mxu0  ;;  %3756 = vmatmul.mubr.msk.f32.gmra.mxu1 %vm2189_vm4, %v2167_v42 }
 0x340   :  { %v2168_v52 = vmax.f32 %v2073_v33, 0.0 }
 0x341   :  { %v3705_v13 = vpop.f32.mrf.mxu0 }
 0x342   :  { %3758 = vmatprep.mubr.msk.f32.mxu1 %vm2189_vm4, %v2168_v52  ;;  %v2171_v37 = vmax.f32 %v3705_v13, 0.0 }
 0x343   :  { %v2083_v31 = vpop.f32.mrf.mxu0  ;;  %3759 = vmatmul.mubr.msk.f32.gmra.mxu1 %vm2189_vm4, %v2169_v3 }
 0x344   :  { %v2170_v50 = vmax.f32 %v2083_v31, 0.0 }
 0x345   :  { %v3708_v19 = vpop.f32.mrf.mxu0 }
 0x346   :  { %3761 = vmatprep.mubr.msk.f32.mxu1 %vm2189_vm4, %v2170_v50  ;;  %v2173_v27 = vmax.f32 %v3708_v19, 0.0 }
 0x347   :  { %v2093_v40 = vpop.f32.mrf.mxu0  ;;  %3762 = vmatmul.mubr.msk.f32.gmra.mxu1 %vm2189_vm4, %v2171_v37 }
 0x348   :  { %v2172_v20 = vmax.f32 %v2093_v40, 0.0 }
 0x349   :  { %v3711_v28 = vpop.f32.mrf.mxu0 }
 0x34a   :  { %3764 = vmatprep.mubr.msk.f32.mxu1 %vm2189_vm4, %v2172_v20  ;;  %v2175_v33 = vmax.f32 %v3711_v28, 0.0 }
 0x34b   :  { %v2103_v42 = vpop.f32.mrf.mxu0  ;;  %3765 = vmatmul.mubr.msk.f32.gmra.mxu1 %vm2189_vm4, %v2173_v27 }
 0x34c   :  { %v2174_v8 = vmax.f32 %v2103_v42, 0.0 }
 0x34d   :  { %v3714_v52 = vpop.f32.mrf.mxu0 }
 0x34e   :  { %3767 = vmatprep.mubr.msk.f32.mxu1 %vm2189_vm4, %v2174_v8  ;;  %v2177_v31 = vmax.f32 %v3714_v52, 0.0 }
 0x34f   :  { %v2113_v3 = vpop.f32.mrf.mxu0  ;;  %3768 = vmatmul.mubr.msk.f32.gmra.mxu1 %vm2189_vm4, %v2175_v33 }
 0x350   :  { %v2176_v13 = vmax.f32 %v2113_v3, 0.0 }
 0x351   :  { %v3717_v50 = vpop.f32.mrf.mxu0 }
 0x352   :  { %3770 = vmatprep.mubr.msk.f32.mxu1 %vm2189_vm4, %v2176_v13  ;;  %v2179_v40 = vmax.f32 %v3717_v50, 0.0 }
 0x353   :  { %v2123_v37 = vpop.f32.mrf.mxu0  ;;  %3771 = vmatmul.mubr.msk.f32.gmra.mxu1 %vm2189_vm4, %v2177_v31 }
 0x354   :  { %v2178_v19 = vmax.f32 %v2123_v37, 0.0 }
 0x355   :  { %v3720_v20 = vpop.f32.mrf.mxu0 }
 0x356   :  { %3773 = vmatprep.mubr.msk.f32.mxu1 %vm2189_vm4, %v2178_v19  ;;  %v2181_v42 = vmax.f32 %v3720_v20, 0.0 }
 0x357   :  { %v2133_v27 = vpop.f32.mrf.mxu0  ;;  %3774 = vmatmul.mubr.msk.f32.gmra.mxu1 %vm2189_vm4, %v2179_v40 }
 0x358   :  { %v2180_v28 = vmax.f32 %v2133_v27, 0.0 }
 0x359   :  { %v3723_v8 = vpop.f32.mrf.mxu0 }
 0x35a   :  { %3776 = vmatprep.mubr.msk.f32.mxu1 %vm2189_vm4, %v2180_v28  ;;  %v2183_v3 = vmax.f32 %v3723_v8, 0.0 }
 0x35b   :  { %v2143_v33 = vpop.f32.mrf.mxu0  ;;  %3777 = vmatmul.mubr.msk.f32.gmra.mxu1 %vm2189_vm4, %v2181_v42 }
 0x35c   :  { %v2182_v52 = vmax.f32 %v2143_v33, 0.0 }
 0x35e   :  { %3779 = vmatprep.mubr.msk.f32.mxu1 %vm2189_vm4, %v2182_v52 }
 0x35f   :  { %3780 = vmatmul.mubr.msk.f32.gmra.mxu1 %vm2189_vm4, %v2183_v3 }
 0x3e3   :  { %v3736_v13 = vpop.f32.mrf.mxu1 }
 0x3e4   :  { %3787 = vtanh.f32 %v3736_v13 }
 0x3e5   :  { %v2352_v31 = vpop.f32.mrf.mxu1 }
 0x3e6   :  { %3789 = vtanh.f32 %v2352_v31 }
 0x3e7   :  { %v3739_v50 = vpop.f32.mrf.mxu1 }
 0x3e8   :  { %3791 = vtanh.f32 %v3739_v50 }
 0x3e9   :  { %v2362_v37 = vpop.f32.mrf.mxu1 }
 0x3ea   :  { %3793 = vtanh.f32 %v2362_v37 }
 0x3eb   :  { %v3742_v19 = vpop.f32.mrf.mxu1 }
 0x3ec   :  { %3795 = vtanh.f32 %v3742_v19 }
 0x3ed   :  { %v2372_v40 = vpop.f32.mrf.mxu1 }
 0x3ee   :  { %3797 = vtanh.f32 %v2372_v40 }
 0x3ef   :  { %v3745_v20 = vpop.f32.mrf.mxu1 }
 0x3f0   :  { %3799 = vtanh.f32 %v3745_v20 }
 0x3f1   :  { %v3788_v27 = vpop.eup %3787  ;;  %v2382_v28 = vpop.f32.mrf.mxu1 }
 0x3f2   :  { %3801 = vtanh.f32 %v2382_v28  ;;  %2646 = vrot.lane.b32.xlu1 %v3788_v27, %s4012_s2 }
 0x3f3   :  { %v3790_v42 = vpop.eup %3789  ;;  %v3748_v8 = vpop.f32.mrf.mxu1 }
 0x3f4   :  { %3803 = vtanh.f32 %v3748_v8  ;;  %2644 = vrot.lane.b32.xlu0 %v3790_v42, %s4012_s2 }
 0x3f5   :  { %v3792_v33 = vpop.eup %3791  ;;  %v2392_v52 = vpop.f32.mrf.mxu1 }
 0x3f6   :  { %3805 = vtanh.f32 %v2392_v52  ;;  %2650 = vrot.lane.b32.xlu1 %v3792_v33, %s4012_s2 }
 0x3f7   :  { %v3794_v3 = vpop.eup %3793  ;;  %v3751_v13 = vpop.f32.mrf.mxu1 }
 0x3f8   :  { %3807 = vtanh.f32 %v3751_v13  ;;  %2648 = vrot.lane.b32.xlu0 %v3794_v3, %s4012_s2 }
 0x3f9   :  { %v3796_v31 = vpop.eup %3795  ;;  %v2402_v50 = vpop.f32.mrf.mxu1 }
 0x3fa   :  { %3809 = vtanh.f32 %v2402_v50  ;;  %2654 = vrot.lane.b32.xlu1 %v3796_v31, %s4012_s2 }
 0x3fb   :  { %v3798_v37 = vpop.eup %3797  ;;  %v3754_v19 = vpop.f32.mrf.mxu1 }
 0x3fc   :  { %3811 = vtanh.f32 %v3754_v19  ;;  %2652 = vrot.lane.b32.xlu0 %v3798_v37, %s4012_s2 }
 0x3fd   :  { %v3800_v40 = vpop.eup %3799  ;;  %v2412_v20 = vpop.f32.mrf.mxu1 }
 0x3fe   :  { %3813 = vtanh.f32 %v2412_v20  ;;  %2658 = vrot.lane.b32.xlu1 %v3800_v40, %s4012_s2 }
 0x3ff   :  { %v3802_v27 = vpop.eup %3801  ;;  %v3757_v28 = vpop.f32.mrf.mxu1 }
 0x400   :  { %3815 = vtanh.f32 %v3757_v28  ;;  %2656 = vrot.lane.b32.xlu0 %v3802_v27, %s4012_s2 }
 0x401   :  { %v3804_v42 = vpop.eup %3803  ;;  %v2422_v8 = vpop.f32.mrf.mxu1 }
 0x402   :  { %3817 = vtanh.f32 %v2422_v8  ;;  %2662 = vrot.lane.b32.xlu1 %v3804_v42, %s4012_s2 }
 0x403   :  { %v3806_v33 = vpop.eup %3805  ;;  %v3760_v52 = vpop.f32.mrf.mxu1 }
 0x404   :  { %3819 = vtanh.f32 %v3760_v52  ;;  %2660 = vrot.lane.b32.xlu0 %v3806_v33, %s4012_s2 }
 0x405   :  { %v3808_v3 = vpop.eup %3807  ;;  %v2432_v13 = vpop.f32.mrf.mxu1 }
 0x406   :  { %3821 = vtanh.f32 %v2432_v13  ;;  %2666 = vrot.lane.b32.xlu1 %v3808_v3, %s4012_s2 }
 0x407   :  { %v3810_v31 = vpop.eup %3809  ;;  %v3763_v50 = vpop.f32.mrf.mxu1 }
 0x408   :  { %3823 = vtanh.f32 %v3763_v50  ;;  %2664 = vrot.lane.b32.xlu0 %v3810_v31, %s4012_s2 }
 0x409   :  { %v3812_v37 = vpop.eup %3811  ;;  %v2442_v19 = vpop.f32.mrf.mxu1 }
 0x40a   :  { %3825 = vtanh.f32 %v2442_v19  ;;  %2670 = vrot.lane.b32.xlu1 %v3812_v37, %s4012_s2 }
 0x40b   :  { %v3814_v40 = vpop.eup %3813  ;;  %v3766_v20 = vpop.f32.mrf.mxu1 }
 0x40c   :  { %3827 = vtanh.f32 %v3766_v20  ;;  %2668 = vrot.lane.b32.xlu0 %v3814_v40, %s4012_s2 }
 0x40d   :  { %v3816_v27 = vpop.eup %3815  ;;  %v2452_v28 = vpop.f32.mrf.mxu1 }
 0x40e   :  { %3829 = vtanh.f32 %v2452_v28  ;;  %2674 = vrot.lane.b32.xlu1 %v3816_v27, %s4012_s2 }
 0x40f   :  { %v3818_v42 = vpop.eup %3817  ;;  %v3769_v8 = vpop.f32.mrf.mxu1 }
 0x410   :  { %3831 = vtanh.f32 %v3769_v8  ;;  %2672 = vrot.lane.b32.xlu0 %v3818_v42, %s4012_s2 }
 0x411   :  { %v3820_v33 = vpop.eup %3819  ;;  %v2462_v52 = vpop.f32.mrf.mxu1 }
 0x412   :  { %3833 = vtanh.f32 %v2462_v52  ;;  %2678 = vrot.lane.b32.xlu1 %v3820_v33, %s4012_s2 }
 0x413   :  { %v3822_v3 = vpop.eup %3821  ;;  %v3772_v13 = vpop.f32.mrf.mxu1 }
 0x414   :  { %3835 = vtanh.f32 %v3772_v13  ;;  %2676 = vrot.lane.b32.xlu0 %v3822_v3, %s4012_s2 }
 0x415   :  { %v3824_v31 = vpop.eup %3823  ;;  %v2472_v50 = vpop.f32.mrf.mxu1 }
 0x416   :  { %3837 = vtanh.f32 %v2472_v50  ;;  %2682 = vrot.lane.b32.xlu1 %v3824_v31, %s4012_s2 }
 0x417   :  { %v3826_v37 = vpop.eup %3825  ;;  %v3775_v19 = vpop.f32.mrf.mxu1 }
 0x418   :  { %3839 = vtanh.f32 %v3775_v19  ;;  %2680 = vrot.lane.b32.xlu0 %v3826_v37, %s4012_s2 }
 0x419   :  { %v3828_v40 = vpop.eup %3827  ;;  %v2482_v20 = vpop.f32.mrf.mxu1 }
 0x41a   :  { %3841 = vtanh.f32 %v2482_v20  ;;  %2686 = vrot.lane.b32.xlu1 %v3828_v40, %s4012_s2 }
 0x41b   :  { %v3830_v27 = vpop.eup %3829  ;;  %v3778_v28 = vpop.f32.mrf.mxu1 }
 0x41c   :  { %3843 = vtanh.f32 %v3778_v28  ;;  %2684 = vrot.lane.b32.xlu0 %v3830_v27, %s4012_s2 }
 0x41d   :  { %v3832_v42 = vpop.eup %3831  ;;  %v2492_v8 = vpop.f32.mrf.mxu1 }
 0x41e   :  { %3845 = vtanh.f32 %v2492_v8  ;;  %2690 = vrot.lane.b32.xlu1 %v3832_v42, %s4012_s2 }
 0x41f   :  { %v3834_v33 = vpop.eup %3833  ;;  %v3781_v52 = vpop.f32.mrf.mxu1 }
 0x420   :  { %3847 = vtanh.f32 %v3781_v52  ;;  %2688 = vrot.lane.b32.xlu0 %v3834_v33, %s4012_s2 }
 0x421   :  { %v3836_v3 = vpop.eup %3835  ;;  %v2502_v13 = vpop.f32.mrf.mxu1 }
 0x422   :  { %3849 = vtanh.f32 %v2502_v13  ;;  %2694 = vrot.lane.b32.xlu1 %v3836_v3, %s4012_s2 }
 0x423   :  { %v3838_v31 = vpop.eup %3837  ;;  %3851 = vtanh.f32 %v4734_v32 }
 0x424   :  { %2692 = vrot.lane.b32.xlu0 %v3838_v31, %s4012_s2  ;;  %3853 = vtanh.f32 %v4736_v34 }
 0x425   :  { %v3840_v50 = vpop.eup %3839  ;;  %3855 = vtanh.f32 %v4740_v39 }
 0x426   :  { %2698 = vrot.lane.b32.xlu1 %v3840_v50, %s4012_s2  ;;  %3857 = vtanh.f32 %v4743_v41 }
 0x427   :  { %v3842_v37 = vpop.eup %3841  ;;  %3859 = vtanh.f32 %v4748_v45 }
 0x428   :  { %2696 = vrot.lane.b32.xlu0 %v3842_v37, %s4012_s2  ;;  %3861 = vtanh.f32 %v4751_v46 }
 0x429   :  { %v3844_v19 = vpop.eup %3843  ;;  %3863 = vtanh.f32 %v4756_v49 }
 0x42a   :  { %2702 = vrot.lane.b32.xlu1 %v3844_v19, %s4012_s2  ;;  %3865 = vtanh.f32 %v4759_v51 }
 0x42b   :  { %v3846_v40 = vpop.eup %3845  ;;  %3867 = vtanh.f32 %v4764_v5 }
 0x42c   :  { %2700 = vrot.lane.b32.xlu0 %v3846_v40, %s4012_s2  ;;  %3869 = vtanh.f32 %v4767_v6 }
 0x42d   :  { %v3848_v20 = vpop.eup %3847  ;;  %3871 = vtanh.f32 %v4772_v11 }
 0x42e   :  { %2706 = vrot.lane.b32.xlu1 %v3848_v20, %s4012_s2  ;;  %3873 = vtanh.f32 %v4775_v14 }
 0x42f   :  { %v3850_v27 = vpop.eup %3849  ;;  %3875 = vtanh.f32 %v4780_v18 }
 0x430   :  { %2704 = vrot.lane.b32.xlu0 %v3850_v27, %s4012_s2  ;;  %v3852_v28 = vpop.eup %3851  ;;  %3877 = vtanh.f32 %v4783_v21 }
 0x431   :  { %v3854_v33 = vpop.eup %3853  ;;  %3879 = vtanh.f32 %v4788_v25 }
 0x432   :  { %v3856_v34 = vpop.eup %3855  ;;  %3881 = vtanh.f32 %v4791_v26 }
 0x433   :  { %v3858_v45 = vpop.eup %3857  ;;  %3883 = vtanh.f32 %v4796_v35 }
 0x434   :  { %v3860_v51 = vpop.eup %3859  ;;  %3885 = vtanh.f32 %v4799_v36 }
 0x435   :  { %v3862_v13 = vpop.eup %3861  ;;  %3887 = vtanh.f32 %v4804_v47 }
 0x436   :  { %v3864_v50 = vpop.eup %3863  ;;  %3889 = vtanh.f32 %v4807_v48 }
 0x437   :  { %v3866_v19 = vpop.eup %3865  ;;  %3891 = vtanh.f32 %v4812_v7 }
 0x438   :  { %v3868_v20 = vpop.eup %3867  ;;  %3893 = vtanh.f32 %v4815_v12 }
 0x439   :  { %3895 = vtanh.f32 %v4820_v22 }
 0x43a   :  { %3897 = vtanh.f32 %v4823_v24 }
 0x43b   :  { %3899 = vtanh.f32 %v4828_v43 }
 0x464   :  { %v2647_v42 = vpop.permute.xlu1 %2646 }
 0x465   :  { %v2741_v8 = vmul.f32 %v3852_v28, %v2647_v42  ;;  %v3870_v28 = vpop.eup %3869  ;;  %3901 = vtanh.f32 %v4831_v44 }
 0x466   :  { %v2645_v52 = vpop.permute.xlu0 %2644 }
 0x467   :  { %v2740_v32 = vmul.f32 %v3854_v33, %v2645_v52  ;;  %2806 = vrot.lane.b32.xlu1 %v2741_v8, %s4013_s16  ;;  %v3872_v8 = vpop.eup %3871  ;;  %3903 = vtanh.f32 %v4836_v15 }
 0x468   :  { %v2651_v39 = vpop.permute.xlu1 %2650  ;;  %v3874_v52 = vpop.eup %3873  ;;  %3905 = vtanh.f32 %v4839_v17 }
 0x469   :  { %v2743_v41 = vmul.f32 %v3856_v34, %v2651_v39  ;;  %2804 = vrot.lane.b32.xlu0 %v2740_v32, %s4013_s16  ;;  %v3876_v34 = vpop.eup %3875  ;;  %3907 = vtanh.f32 %v4844_v4 }
 0x46a   :  { %v2649_v46 = vpop.permute.xlu0 %2648 }
 0x46b   :  { %v2742_v49 = vmul.f32 %v3858_v45, %v2649_v46  ;;  %2810 = vrot.lane.b32.xlu1 %v2743_v41, %s4013_s16  ;;  %v3878_v41 = vpop.eup %3877  ;;  %3909 = vtanh.f32 %v4847_v30 }
 0x46c   :  { %v2655_v5 = vpop.permute.xlu1 %2654  ;;  %v3880_v46 = vpop.eup %3879  ;;  %3911 = vtanh.f32 %v4852_v23 }
 0x46d   :  { %v2745_v3 = vmul.f32 %v3860_v51, %v2655_v5  ;;  %2808 = vrot.lane.b32.xlu0 %v2742_v49, %s4013_s16  ;;  %v3882_v51 = vpop.eup %3881  ;;  %3913 = vtanh.f32 %v4855_v63 }
 0x46e   :  { %v2653_v31 = vpop.permute.xlu0 %2652 }
 0x46f   :  { %v2744_v6 = vmul.f32 %v3862_v13, %v2653_v31  ;;  %2814 = vrot.lane.b32.xlu1 %v2745_v3, %s4013_s16  ;;  %v3884_v3 = vpop.eup %3883 }
 0x470   :  { %v2659_v37 = vpop.permute.xlu1 %2658  ;;  %v3886_v31 = vpop.eup %3885 }
 0x471   :  { %v2747_v11 = vmul.f32 %v3864_v50, %v2659_v37  ;;  %2812 = vrot.lane.b32.xlu0 %v2744_v6, %s4013_s16  ;;  %v3888_v50 = vpop.eup %3887 }
 0x472   :  { %v2657_v40 = vpop.permute.xlu0 %2656 }
 0x473   :  { %v2746_v14 = vmul.f32 %v3866_v19, %v2657_v40  ;;  %2818 = vrot.lane.b32.xlu1 %v2747_v11, %s4013_s16  ;;  %v3890_v11 = vpop.eup %3889 }
 0x474   :  { %v2663_v27 = vpop.permute.xlu1 %2662  ;;  %v3892_v40 = vpop.eup %3891 }
 0x475   :  { %v2749_v18 = vmul.f32 %v3868_v20, %v2663_v27  ;;  %2816 = vrot.lane.b32.xlu0 %v2746_v14, %s4013_s16  ;;  %v3894_v20 = vpop.eup %3893 }
 0x476   :  { %v2661_v42 = vpop.permute.xlu0 %2660 }
 0x477   :  { %v2748_v21 = vmul.f32 %v3870_v28, %v2661_v42  ;;  %2822 = vrot.lane.b32.xlu1 %v2749_v18, %s4013_s16  ;;  %v3896_v18 = vpop.eup %3895 }
 0x478   :  { %v2667_v33 = vpop.permute.xlu1 %2666  ;;  %v3898_v42 = vpop.eup %3897 }
 0x479   :  { %v2751_v25 = vmul.f32 %v3872_v8, %v2667_v33  ;;  %2820 = vrot.lane.b32.xlu0 %v2748_v21, %s4013_s16  ;;  %v3900_v8 = vpop.eup %3899 }
 0x47a   :  { %v2665_v32 = vpop.permute.xlu0 %2664 }
 0x47b   :  { %v2750_v26 = vmul.f32 %v3874_v52, %v2665_v32  ;;  %2826 = vrot.lane.b32.xlu1 %v2751_v25, %s4013_s16  ;;  %v3902_v25 = vpop.eup %3901 }
 0x47c   :  { %v2671_v39 = vpop.permute.xlu1 %2670  ;;  %v3904_v32 = vpop.eup %3903 }
 0x47d   :  { %v2753_v35 = vmul.f32 %v3876_v34, %v2671_v39  ;;  %2824 = vrot.lane.b32.xlu0 %v2750_v26, %s4013_s16  ;;  %v3906_v23 = vpop.eup %3905 }
 0x47e   :  { %v2669_v45 = vpop.permute.xlu0 %2668 }
 0x47f   :  { %v2752_v36 = vmul.f32 %v3878_v41, %v2669_v45  ;;  %2830 = vrot.lane.b32.xlu1 %v2753_v35, %s4013_s16  ;;  %v3908_v41 = vpop.eup %3907 }
 0x480   :  { %v2675_v49 = vpop.permute.xlu1 %2674 }
 0x481   :  { %v2755_v47 = vmul.f32 %v3880_v46, %v2675_v49  ;;  %2828 = vrot.lane.b32.xlu0 %v2752_v36, %s4013_s16  ;;  %v3910_v36 = vpop.eup %3909 }
 0x482   :  { %v2673_v5 = vpop.permute.xlu0 %2672 }
 0x483   :  { %v2754_v48 = vmul.f32 %v3882_v51, %v2673_v5  ;;  %2834 = vrot.lane.b32.xlu1 %v2755_v47, %s4013_s16  ;;  %v3912_v47 = vpop.eup %3911 }
 0x484   :  { %v2679_v13 = vpop.permute.xlu1 %2678 }
 0x485   :  { %v2757_v7 = vmul.f32 %v3884_v3, %v2679_v13  ;;  %2832 = vrot.lane.b32.xlu0 %v2754_v48, %s4013_s16  ;;  %v3914_v48 = vpop.eup %3913 }
 0x486   :  { %v2677_v6 = vpop.permute.xlu0 %2676 }
 0x487   :  { %v2756_v12 = vmul.f32 %v3886_v31, %v2677_v6  ;;  %2838 = vrot.lane.b32.xlu1 %v2757_v7, %s4013_s16  ;;  %v4993_v7 = vld [vmem:[%s5283_s3] ss:$0 sm:$0xff] }
 0x488   :  { %v2683_v37 = vpop.permute.xlu1 %2682  ;;  %v2549_v31 = vmul.f32 %v4993_v7, %v4461_v56  ;;  %v2548_v6 = vmul.f32 %v4993_v7, %v4457_v54  ;;  %v2555_v54 = vmul.f32 %v4993_v7, %v4467_v59  ;;  %v2559_v59 = vmul.f32 %v4993_v7, %v4480_v0 }
 0x489   :  { %v2759_v22 = vmul.f32 %v3888_v50, %v2683_v37  ;;  %2836 = vrot.lane.b32.xlu0 %v2756_v12, %s4013_s16  ;;  %v2551_v12 = vmul.f32 %v4993_v7, %v4459_v55  ;;  %v2550_v50 = vmul.f32 %v4993_v7, %v4455_v53  ;;  %v2553_v37 = vmul.f32 %v4993_v7, %v4463_v57 }
 0x48a   :  { %v2681_v19 = vpop.permute.xlu0 %2680  ;;  %3915 = vtanh.f32 %v2549_v31  ;;  %v2554_v55 = vmul.f32 %v4993_v7, %v4469_v60  ;;  %v2557_v53 = vmul.f32 %v4993_v7, %v4471_v61  ;;  %v2556_v57 = vmul.f32 %v4993_v7, %v4473_v62  ;;  %v3979_v60 = vld [vmem:[%s5285_s0 + $0x8] sm:$0xff]  ;;  %v3980_v62 = vld [vmem:[%s5285_s0] sm:$0xff] }
 0x48b   :  { %v2758_v24 = vmul.f32 %v3890_v11, %v2681_v19  ;;  %2842 = vrot.lane.b32.xlu1 %v2759_v22, %s4013_s16  ;;  %3917 = vtanh.f32 %v2548_v6  ;;  %v2552_v22 = vmul.f32 %v4993_v7, %v4465_v58  ;;  %v5316_v6 = vld [vmem:[#allocation2_spill] sm:$0xff] }
 0x48c   :  { %v2687_v14 = vpop.permute.xlu1 %2686  ;;  %3919 = vtanh.f32 %v2551_v12  ;;  %v2567_v12 = vmul.f32 %v4993_v7, %v5316_v6  ;;  %v5325_v6 = vld [vmem:[#allocation11_spill] sm:$0xff] }
 0x48d   :  { %v2761_v43 = vmul.f32 %v3892_v40, %v2687_v14  ;;  %2840 = vrot.lane.b32.xlu0 %v2758_v24, %s4013_s16  ;;  %3921 = vtanh.f32 %v2550_v50 }
 0x48e   :  { %v2685_v27 = vpop.permute.xlu0 %2684  ;;  %3923 = vtanh.f32 %v2553_v37 }
 0x48f   :  { %v2760_v44 = vmul.f32 %v3894_v20, %v2685_v27  ;;  %2846 = vrot.lane.b32.xlu1 %v2761_v43, %s4013_s16  ;;  %3925 = vtanh.f32 %v2552_v22  ;;  %v2558_v20 = vmul.f32 %v4993_v7, %v4484_v2  ;;  %v3981_v2 = vld [vmem:[%s5285_s0 + $0x18] sm:$0xff] }
 0x490   :  { %v2691_v28 = vpop.permute.xlu1 %2690  ;;  %3927 = vtanh.f32 %v2555_v54 }
 0x491   :  { %v2763_v15 = vmul.f32 %v3896_v18, %v2691_v28  ;;  %2844 = vrot.lane.b32.xlu0 %v2760_v44, %s4013_s16  ;;  %3929 = vtanh.f32 %v2554_v55  ;;  %v2561_v28 = vmul.f32 %v4993_v7, %v4490_v10  ;;  %v3982_v10 = vld [vmem:[%s5285_s0 + $0x10] sm:$0xff]  ;;  %v5317_v55 = vld [vmem:[#allocation3_spill] sm:$0xff] }
 0x492   :  { %v2689_v21 = vpop.permute.xlu0 %2688  ;;  %3931 = vtanh.f32 %v2557_v53  ;;  %v2566_v53 = vmul.f32 %v4993_v7, %v5317_v55  ;;  %v5326_v55 = vld [vmem:[#allocation12_spill] sm:$0xff] }
 0x493   :  { %v2762_v17 = vmul.f32 %v3898_v42, %v2689_v21  ;;  %2850 = vrot.lane.b32.xlu1 %v2763_v15, %s4013_s16  ;;  %3933 = vtanh.f32 %v2556_v57 }
 0x494   :  { %v2695_v33 = vpop.permute.xlu1 %2694  ;;  %3935 = vtanh.f32 %v2559_v59 }
 0x495   :  { %v2765_v4 = vmul.f32 %v3900_v8, %v2695_v33  ;;  %2848 = vrot.lane.b32.xlu0 %v2762_v17, %s4013_s16  ;;  %3937 = vtanh.f32 %v2558_v20  ;;  %v2560_v8 = vmul.f32 %v4993_v7, %v4497_v16  ;;  %v3983_v16 = vld [vmem:[%s5285_s0 + $0x28] sm:$0xff]  ;;  %v5319_v20 = vld [vmem:[#allocation5_spill] sm:$0xff] }
 0x496   :  { %v2693_v52 = vpop.permute.xlu0 %2692  ;;  %3939 = vtanh.f32 %v2561_v28 }
 0x497   :  { %v2764_v30 = vmul.f32 %v3902_v25, %v2693_v52  ;;  %2854 = vrot.lane.b32.xlu1 %v2765_v4, %s4013_s16  ;;  %v3916_v56 = vpop.eup %3915  ;;  %3941 = vtanh.f32 %v2560_v8 }
 0x498   :  { %v2699_v26 = vpop.permute.xlu1 %2698  ;;  %v3918_v58 = vpop.eup %3917 }
 0x499   :  { %v2767_v34 = vmul.f32 %v3904_v32, %v2699_v26  ;;  %2852 = vrot.lane.b32.xlu0 %v2764_v30, %s4013_s16  ;;  %v3920_v61 = vpop.eup %3919  ;;  %v2563_v30 = vmul.f32 %v4993_v7, %v4505_v29  ;;  %v3984_v29 = vld [vmem:[%s5285_s0 + $0x20] sm:$0xff] }
 0x49a   :  { %v2697_v39 = vpop.permute.xlu0 %2696  ;;  %v3922_v44 = vpop.eup %3921 }
 0x49b   :  { %v2766_v35 = vmul.f32 %v3906_v23, %v2697_v39  ;;  %2858 = vrot.lane.b32.xlu1 %v2767_v34, %s4013_s16  ;;  %v3924_v21 = vpop.eup %3923  ;;  %v2562_v39 = vmul.f32 %v4993_v7, %v4510_v38  ;;  %3943 = vtanh.f32 %v2563_v30  ;;  %v3985_v38 = vld [vmem:[%s5285_s0 + $0x38] sm:$0xff] }
 0x49c   :  { %v2703_v63 = vpop.permute.xlu1 %2702  ;;  %v3926_v25 = vpop.eup %3925 }
 0x49d   :  { %v2769_v45 = vmul.f32 %v3908_v41, %v2703_v63  ;;  %2856 = vrot.lane.b32.xlu0 %v2766_v35, %s4013_s16  ;;  %v3928_v34 = vpop.eup %3927  ;;  %3945 = vtanh.f32 %v2562_v39 }
 0x49e   :  { %v2701_v46 = vpop.permute.xlu0 %2700  ;;  %v3930_v63 = vpop.eup %3929 }
 0x49f   :  { %v2768_v49 = vmul.f32 %v3910_v36, %v2701_v46  ;;  %2862 = vrot.lane.b32.xlu1 %v2769_v45, %s4013_s16  ;;  %v2565_v36 = vmul.f32 %v4993_v7, %v4520_v1  ;;  %v3986_v1 = vld [vmem:[%s5285_s0 + $0x30] sm:$0xff] }
 0x4a0   :  { %v2707_v51 = vpop.permute.xlu1 %2706 }
 0x4a1   :  { %v2771_v5 = vmul.f32 %v3912_v47, %v2707_v51  ;;  %2860 = vrot.lane.b32.xlu0 %v2768_v49, %s4013_s16  ;;  %v3932_v47 = vpop.eup %3931  ;;  %3947 = vtanh.f32 %v2565_v36  ;;  %v3994_v36 = vld [vmem:[%s5285_s0 + $0x70] sm:$0xff] }
 0x4a2   :  { %v2705_v3 = vpop.permute.xlu0 %2704 }
 0x4a3   :  { %v2770_v13 = vmul.f32 %v3914_v48, %v2705_v3  ;;  %2866 = vrot.lane.b32.xlu1 %v2771_v5, %s4013_s16  ;;  %v2564_v5 = vmul.f32 %v4993_v7, %v4527_v9  ;;  %v3987_v9 = vld [vmem:[%s5285_s0 + $0x48] sm:$0xff] }
 0x4a5   :  { %2864 = vrot.lane.b32.xlu0 %v2770_v13, %s4013_s16  ;;  %v3934_v13 = vpop.eup %3933  ;;  %3949 = vtanh.f32 %v2564_v5 }
 0x4a6   :  { %v3936_v22 = vpop.eup %3935  ;;  %3951 = vtanh.f32 %v2567_v12  ;;  %v2574_v12 = vmul.f32 %v4993_v7, %v5325_v6 }
 0x4a7   :  { %3953 = vtanh.f32 %v2566_v53  ;;  %v2577_v53 = vmul.f32 %v4993_v7, %v5326_v55 }
 0x4d9   :  { %v2807_v11 = vpop.permute.xlu1 %2806 }
 0x4da   :  { %v2901_v19 = vmul.f32 %v3916_v56, %v2807_v11  ;;  %v3988_v56 = vld [vmem:[%s5285_s0 + $0x40] sm:$0xff] }
 0x4db   :  { %v2805_v24 = vpop.permute.xlu0 %2804 }
 0x4dc   :  { %v2933_v40 = vadd.f32 %v3979_v60, %v2901_v19  ;;  %v2900_v14 = vmul.f32 %v3918_v58, %v2805_v24  ;;  %v3938_v19 = vpop.eup %3937  ;;  %v5318_v24 = vld [vmem:[#allocation4_spill] sm:$0xff]  ;;  %v3989_v60 = vld [vmem:[%s5285_s0 + $0x58] sm:$0xff] }
 0x4dd   :  { %v2811_v43 = vpop.permute.xlu1 %2810  ;;  %v2569_v59 = vmul.f32 %v4993_v7, %v5318_v24  ;;  %v5327_v24 = vld [vmem:[#allocation13_spill] sm:$0xff] }
 0x4de   :  { %2965 = vst.msk [vmem:[%s5287_s4 + $0x8] sm:$0xff] %vm83_vm1, %v2933_v40  ;;  %v2932_v0 = vadd.f32 %v3980_v62, %v2900_v14  ;;  %v2903_v27 = vmul.f32 %v3920_v61, %v2811_v43  ;;  %v3940_v61 = vpop.eup %3939  ;;  %v2568_v62 = vmul.f32 %v4993_v7, %v5319_v20  ;;  %v5328_v20 = vld [vmem:[#allocation14_spill] sm:$0xff] }
 0x4df   :  { %v2809_v18 = vpop.permute.xlu0 %2808  ;;  %3955 = vtanh.f32 %v2569_v59  ;;  %v2576_v59 = vmul.f32 %v4993_v7, %v5327_v24  ;;  %v4010_v24 = vld [vmem:[%s5285_s0 + $0xf0] sm:$0xff] }
 0x4e0   :  { %2964 = vst.msk [vmem:[%s5287_s4] sm:$0xff] %vm83_vm1, %v2932_v0  ;;  %v2935_v15 = vadd.f32 %v3981_v2, %v2903_v27  ;;  %v2902_v42 = vmul.f32 %v3922_v44, %v2809_v18  ;;  %v3990_v0 = vld [vmem:[%s5285_s0 + $0x50] sm:$0xff]  ;;  %v3942_v18 = vpop.eup %3941  ;;  %v5320_v2 = vld [vmem:[#allocation6_spill] sm:$0xff]  ;;  %3957 = vtanh.f32 %v2568_v62  ;;  %v2579_v62 = vmul.f32 %v4993_v7, %v5328_v20 }
 0x4e1   :  { %v2815_v17 = vpop.permute.xlu1 %2814  ;;  %v3944_v8 = vpop.eup %3943 }
 0x4e2   :  { %2967 = vst.msk [vmem:[%s5287_s4 + $0x18] sm:$0xff] %vm83_vm1, %v2935_v15  ;;  %v2934_v33 = vadd.f32 %v3982_v10, %v2902_v42  ;;  %v2905_v4 = vmul.f32 %v3924_v21, %v2815_v17  ;;  %v2571_v15 = vmul.f32 %v4993_v7, %v5320_v2  ;;  %v3991_v42 = vld [vmem:[%s5285_s0 + $0x68] sm:$0xff] }
 0x4e3   :  { %v2813_v52 = vpop.permute.xlu0 %2812  ;;  %v5329_v2 = vld [vmem:[#allocation15_spill] sm:$0xff] }
 0x4e4   :  { %2966 = vst.msk [vmem:[%s5287_s4 + $0x10] sm:$0xff] %vm83_vm1, %v2934_v33  ;;  %v2937_v32 = vadd.f32 %v3983_v16, %v2905_v4  ;;  %v2904_v26 = vmul.f32 %v3926_v25, %v2813_v52  ;;  %v5321_v33 = vld [vmem:[#allocation7_spill] sm:$0xff]  ;;  %v3992_v25 = vld [vmem:[%s5285_s0 + $0x60] sm:$0xff]  ;;  %v3946_v16 = vpop.eup %3945  ;;  %3959 = vtanh.f32 %v2571_v15  ;;  %v2578_v15 = vmul.f32 %v4993_v7, %v5329_v2 }
 0x4e5   :  { %v2819_v23 = vpop.permute.xlu1 %2818  ;;  %v2570_v4 = vmul.f32 %v4993_v7, %v5321_v33 }
 0x4e6   :  { %2969 = vst.msk [vmem:[%s5287_s4 + $0x28] sm:$0xff] %vm83_vm1, %v2937_v32  ;;  %v2936_v35 = vadd.f32 %v3984_v29, %v2904_v26  ;;  %v2907_v41 = vmul.f32 %v3928_v34, %v2819_v23  ;;  %v5322_v26 = vld [vmem:[#allocation8_spill] sm:$0xff]  ;;  %v3993_v23 = vld [vmem:[%s5285_s0 + $0x78] sm:$0xff] }
 0x4e7   :  { %v2817_v45 = vpop.permute.xlu0 %2816  ;;  %v2573_v34 = vmul.f32 %v4993_v7, %v5322_v26  ;;  %3961 = vtanh.f32 %v2570_v4 }
 0x4e8   :  { %2968 = vst.msk [vmem:[%s5287_s4 + $0x20] sm:$0xff] %vm83_vm1, %v2936_v35  ;;  %v2939_v46 = vadd.f32 %v3985_v38, %v2907_v41  ;;  %v2906_v49 = vmul.f32 %v3930_v63, %v2817_v45  ;;  %v3948_v35 = vpop.eup %3947  ;;  %v5323_v63 = vld [vmem:[#allocation9_spill] sm:$0xff] }
 0x4e9   :  { %v2823_v51 = vpop.permute.xlu1 %2822  ;;  %v2572_v45 = vmul.f32 %v4993_v7, %v5323_v63  ;;  %3963 = vtanh.f32 %v2573_v34  ;;  %v4004_v63 = vld [vmem:[%s5285_s0 + $0xc0] sm:$0xff] }
 0x4ea   :  { %2971 = vst.msk [vmem:[%s5287_s4 + $0x38] sm:$0xff] %vm83_vm1, %v2939_v46  ;;  %v2938_v48 = vadd.f32 %v3986_v1, %v2906_v49  ;;  %v2909_v3 = vmul.f32 %v3932_v47, %v2823_v51  ;;  %v3950_v49 = vpop.eup %3949  ;;  %v5324_v51 = vld [vmem:[#allocation10_spill] sm:$0xff]  ;;  %v3995_v1 = vld [vmem:[%s5285_s0 + $0x88] sm:$0xff] }
 0x4eb   :  { %v2821_v31 = vpop.permute.xlu0 %2820  ;;  %v2575_v5 = vmul.f32 %v4993_v7, %v5324_v51  ;;  %3965 = vtanh.f32 %v2572_v45  ;;  %v4001_v7 = vld [vmem:[%s5285_s0 + $0xb8] sm:$0xff] }
 0x4ec   :  { %2970 = vst.msk [vmem:[%s5287_s4 + $0x30] sm:$0xff] %vm83_vm1, %v2938_v48  ;;  %v2941_v50 = vadd.f32 %v3987_v9, %v2909_v3  ;;  %v2908_v37 = vmul.f32 %v3934_v13, %v2821_v31  ;;  %v3952_v13 = vpop.eup %3951  ;;  %v3996_v9 = vld [vmem:[%s5285_s0 + $0x80] sm:$0xff] }
 0x4ed   :  { %v2827_v54 = vpop.permute.xlu1 %2826  ;;  %3967 = vtanh.f32 %v2575_v5 }
 0x4ee   :  { %2973 = vst.msk [vmem:[%s5287_s4 + $0x48] sm:$0xff] %vm83_vm1, %v2941_v50  ;;  %v2940_v11 = vadd.f32 %v3988_v56, %v2908_v37  ;;  %v2911_v57 = vmul.f32 %v3936_v22, %v2827_v54  ;;  %v3954_v22 = vpop.eup %3953  ;;  %v3997_v56 = vld [vmem:[%s5285_s0 + $0x98] sm:$0xff]  ;;  %3969 = vtanh.f32 %v2574_v12  ;;  %v4007_v12 = vld [vmem:[%s5285_s0 + $0xe8] sm:$0xff] }
 0x4ef   :  { %v2825_v58 = vpop.permute.xlu0 %2824  ;;  %3971 = vtanh.f32 %v2577_v53 }
 0x4f0   :  { %2972 = vst.msk [vmem:[%s5287_s4 + $0x40] sm:$0xff] %vm83_vm1, %v2940_v11  ;;  %v2943_v40 = vadd.f32 %v3989_v60, %v2911_v57  ;;  %v2910_v14 = vmul.f32 %v3938_v19, %v2825_v58  ;;  %v3956_v19 = vpop.eup %3955  ;;  %v3998_v60 = vld [vmem:[%s5285_s0 + $0x90] sm:$0xff]  ;;  %3973 = vtanh.f32 %v2576_v59 }
 0x4f1   :  { %v2831_v43 = vpop.permute.xlu1 %2830  ;;  %3975 = vtanh.f32 %v2579_v62 }
 0x4f2   :  { %2975 = vst.msk [vmem:[%s5287_s4 + $0x58] sm:$0xff] %vm83_vm1, %v2943_v40  ;;  %v2942_v27 = vadd.f32 %v3990_v0, %v2910_v14  ;;  %v2913_v44 = vmul.f32 %v3940_v61, %v2831_v43  ;;  %v3958_v61 = vpop.eup %3957  ;;  %v3999_v0 = vld [vmem:[%s5285_s0 + $0xa8] sm:$0xff]  ;;  %3977 = vtanh.f32 %v2578_v15 }
 0x4f3   :  { %v2829_v28 = vpop.permute.xlu0 %2828 }
 0x4f4   :  { %2974 = vst.msk [vmem:[%s5287_s4 + $0x50] sm:$0xff] %vm83_vm1, %v2942_v27  ;;  %v2945_v21 = vadd.f32 %v3991_v42, %v2913_v44  ;;  %v2912_v17 = vmul.f32 %v3942_v18, %v2829_v28  ;;  %v3960_v18 = vpop.eup %3959  ;;  %v4000_v42 = vld [vmem:[%s5285_s0 + $0xa0] sm:$0xff] }
 0x4f5   :  { %v2835_v10 = vpop.permute.xlu1 %2834 }
 0x4f6   :  { %2977 = vst.msk [vmem:[%s5287_s4 + $0x68] sm:$0xff] %vm83_vm1, %v2945_v21  ;;  %v2944_v52 = vadd.f32 %v3992_v25, %v2912_v17  ;;  %v2915_v30 = vmul.f32 %v3944_v8, %v2835_v10  ;;  %v3962_v8 = vpop.eup %3961 }
 0x4f7   :  { %v2833_v32 = vpop.permute.xlu0 %2832  ;;  %v3964_v25 = vpop.eup %3963 }
 0x4f8   :  { %2976 = vst.msk [vmem:[%s5287_s4 + $0x60] sm:$0xff] %vm83_vm1, %v2944_v52  ;;  %v2947_v39 = vadd.f32 %v3993_v23, %v2915_v30  ;;  %v2914_v29 = vmul.f32 %v3946_v16, %v2833_v32  ;;  %v4002_v30 = vld [vmem:[%s5285_s0 + $0xb0] sm:$0xff]  ;;  %v3966_v26 = vpop.eup %3965  ;;  %v4003_v23 = vld [vmem:[%s5285_s0 + $0xc8] sm:$0xff] }
 0x4f9   :  { %v2839_v41 = vpop.permute.xlu1 %2838 }
 0x4fa   :  { %2979 = vst.msk [vmem:[%s5287_s4 + $0x78] sm:$0xff] %vm83_vm1, %v2947_v39  ;;  %v2946_v38 = vadd.f32 %v3994_v36, %v2914_v29  ;;  %v2917_v46 = vmul.f32 %v3948_v35, %v2839_v41  ;;  %v3968_v35 = vpop.eup %3967 }
 0x4fb   :  { %v2837_v47 = vpop.permute.xlu0 %2836 }
 0x4fc   :  { %2978 = vst.msk [vmem:[%s5287_s4 + $0x70] sm:$0xff] %vm83_vm1, %v2946_v38  ;;  %v2949_v48 = vadd.f32 %v3995_v1, %v2917_v46  ;;  %v2916_v3 = vmul.f32 %v3950_v49, %v2837_v47  ;;  %v3970_v38 = vpop.eup %3969  ;;  %v4005_v49 = vld [vmem:[%s5285_s0 + $0xd8] sm:$0xff] }
 0x4fd   :  { %v2843_v31 = vpop.permute.xlu1 %2842  ;;  %v3972_v5 = vpop.eup %3971 }
 0x4fe   :  { %2981 = vst.msk [vmem:[%s5287_s4 + $0x88] sm:$0xff] %vm83_vm1, %v2949_v48  ;;  %v2948_v50 = vadd.f32 %v3996_v9, %v2916_v3  ;;  %v2919_v37 = vmul.f32 %v3952_v13, %v2843_v31  ;;  %v4006_v48 = vld [vmem:[%s5285_s0 + $0xd0] sm:$0xff]  ;;  %v3974_v31 = vpop.eup %3973 }
 0x4ff   :  { %v2841_v54 = vpop.permute.xlu0 %2840 }
 0x500   :  { %2980 = vst.msk [vmem:[%s5287_s4 + $0x80] sm:$0xff] %vm83_vm1, %v2948_v50  ;;  %v2951_v11 = vadd.f32 %v3997_v56, %v2919_v37  ;;  %v2918_v57 = vmul.f32 %v3954_v22, %v2841_v54  ;;  %v3976_v37 = vpop.eup %3975  ;;  %v4008_v54 = vld [vmem:[%s5285_s0 + $0xe0] sm:$0xff] }
 0x501   :  { %v2847_v58 = vpop.permute.xlu1 %2846  ;;  %v3978_v56 = vpop.eup %3977 }
 0x502   :  { %2983 = vst.msk [vmem:[%s5287_s4 + $0x98] sm:$0xff] %vm83_vm1, %v2951_v11  ;;  %v2950_v40 = vadd.f32 %v3998_v60, %v2918_v57  ;;  %v2921_v14 = vmul.f32 %v3956_v19, %v2847_v58  ;;  %v4009_v57 = vld [vmem:[%s5285_s0 + $0xf8] sm:$0xff] }
 0x503   :  { %v2845_v43 = vpop.permute.xlu0 %2844 }
 0x504   :  { %2982 = vst.msk [vmem:[%s5287_s4 + $0x90] sm:$0xff] %vm83_vm1, %v2950_v40  ;;  %v2953_v27 = vadd.f32 %v3999_v0, %v2921_v14  ;;  %v2920_v44 = vmul.f32 %v3958_v61, %v2845_v43 }
 0x505   :  { %v2851_v28 = vpop.permute.xlu1 %2850 }
 0x506   :  { %2985 = vst.msk [vmem:[%s5287_s4 + $0xa8] sm:$0xff] %vm83_vm1, %v2953_v27  ;;  %v2952_v21 = vadd.f32 %v4000_v42, %v2920_v44  ;;  %v2923_v17 = vmul.f32 %v3960_v18, %v2851_v28 }
 0x507   :  { %v2849_v10 = vpop.permute.xlu0 %2848 }
 0x508   :  { %2984 = vst.msk [vmem:[%s5287_s4 + $0xa0] sm:$0xff] %vm83_vm1, %v2952_v21  ;;  %v2955_v33 = vadd.f32 %v4001_v7, %v2923_v17  ;;  %v2922_v4 = vmul.f32 %v3962_v8, %v2849_v10 }
 0x509   :  { %v2855_v52 = vpop.permute.xlu1 %2854 }
 0x50a   :  { %2987 = vst.msk [vmem:[%s5287_s4 + $0xb8] sm:$0xff] %vm83_vm1, %v2955_v33  ;;  %v2954_v16 = vadd.f32 %v4002_v30, %v2922_v4  ;;  %v2925_v32 = vmul.f32 %v3964_v25, %v2855_v52 }
 0x50b   :  { %v2853_v34 = vpop.permute.xlu0 %2852 }
 0x50c   :  { %2986 = vst.msk [vmem:[%s5287_s4 + $0xb0] sm:$0xff] %vm83_vm1, %v2954_v16  ;;  %v2957_v39 = vadd.f32 %v4003_v23, %v2925_v32  ;;  %v2924_v29 = vmul.f32 %v3966_v26, %v2853_v34 }
 0x50d   :  { %v2859_v41 = vpop.permute.xlu1 %2858 }
 0x50e   :  { %2989 = vst.msk [vmem:[%s5287_s4 + $0xc8] sm:$0xff] %vm83_vm1, %v2957_v39  ;;  %v2956_v45 = vadd.f32 %v4004_v63, %v2924_v29  ;;  %v2927_v36 = vmul.f32 %v3968_v35, %v2859_v41 }
 0x50f   :  { %v2857_v46 = vpop.permute.xlu0 %2856 }
 0x510   :  { %2988 = vst.msk [vmem:[%s5287_s4 + $0xc0] sm:$0xff] %vm83_vm1, %v2956_v45  ;;  %v2959_v47 = vadd.f32 %v4005_v49, %v2927_v36  ;;  %v2926_v51 = vmul.f32 %v3970_v38, %v2857_v46 }
 0x511   :  { %v2863_v1 = vpop.permute.xlu1 %2862 }
 0x512   :  { %2991 = vst.msk [vmem:[%s5287_s4 + $0xd8] sm:$0xff] %vm83_vm1, %v2959_v47  ;;  %v2958_v3 = vadd.f32 %v4006_v48, %v2926_v51  ;;  %v2929_v13 = vmul.f32 %v3972_v5, %v2863_v1 }
 0x513   :  { %v2861_v6 = vpop.permute.xlu0 %2860 }
 0x514   :  { %2990 = vst.msk [vmem:[%s5287_s4 + $0xd0] sm:$0xff] %vm83_vm1, %v2958_v3  ;;  %v2961_v9 = vadd.f32 %v4007_v12, %v2929_v13  ;;  %v2928_v50 = vmul.f32 %v3974_v31, %v2861_v6 }
 0x515   :  { %v2867_v22 = vpop.permute.xlu1 %2866 }
 0x516   :  { %2993 = vst.msk [vmem:[%s5287_s4 + $0xe8] sm:$0xff] %vm83_vm1, %v2961_v9  ;;  %v2960_v55 = vadd.f32 %v4008_v54, %v2928_v50  ;;  %v2931_v53 = vmul.f32 %v3976_v37, %v2867_v22 }
 0x517   :  { %v2865_v11 = vpop.permute.xlu0 %2864 }
 0x518   :  { %2992 = vst.msk [vmem:[%s5287_s4 + $0xe0] sm:$0xff] %vm83_vm1, %v2960_v55  ;;  %v2963_v19 = vadd.f32 %v4009_v57, %v2931_v53  ;;  %v2930_v58 = vmul.f32 %v3978_v56, %v2865_v11 }
 0x51a   :  { %2995 = vst.msk [vmem:[%s5287_s4 + $0xf8] sm:$0xff] %vm83_vm1, %v2963_v19  ;;  %v2962_v59 = vadd.f32 %v4010_v24, %v2930_v58 }
 0x51c   :  { %2994 = vst.msk [vmem:[%s5287_s4 + $0xf0] sm:$0xff] %vm83_vm1, %v2962_v59 }

</bundles_post_ra>
